<compile_context>
chip_gen: v7x
topology: tpu7x:2x2x1
jax: 0.10.0
libtpu: 0.0.40
codegen_flags: <defaults>
</compile_context>

<pallas_src>
import functools
import math

import jax
import jax.numpy as jnp
from jax.experimental import pallas as pl
from jax.experimental.pallas import tpu as pltpu


# ----------------------------- kernel helpers ------------------------------

def _layernorm(x, gamma, beta, eps=1e-5):
    mu = jnp.mean(x, axis=-1, keepdims=True)
    var = jnp.mean(jnp.square(x - mu), axis=-1, keepdims=True)
    return (x - mu) * jax.lax.rsqrt(var + eps) * gamma + beta


def _gelu(x):
    # erf-based gelu, matching the PyTorch reference `gelu`
    return x * 0.5 * (1.0 + jax.lax.erf(x * (1.0 / math.sqrt(2.0))))


# --------------------------------- kernel ----------------------------------

def block_kernel(x_ref,
                 ln1_w_ref, ln1_b_ref,
                 wqkv_ref,                      # (C, 3C) bf16, scale folded in Q cols
                 wproj_hm_ref, bproj_ref,       # (H, hd, C) bf16, (1, C) f32
                 ln2_w_ref, ln2_b_ref,
                 w1_ref, b1_ref,                # (C, hidden) bf16, (1, hidden) f32
                 w2_ref, b2_ref,                # (hidden, C) bf16, (1, C) f32
                 o_ref,
                 *, num_heads):
    x = x_ref[0].astype(jnp.float32)            # (N, C); residual math in f32
    N, C = x.shape
    H = num_heads
    hd = C // H

    # ---- attention branch ----
    xn = _layernorm(x, ln1_w_ref[0], ln1_b_ref[0])
    # one MXU-filling matmul: K=C, output width 3C
    qkv = jnp.dot(xn.astype(jnp.bfloat16), wqkv_ref[...],
                  preferred_element_type=jnp.float32)          # (N, 3C) f32

    # Single head-major relayout (replaces 3H lane-offset extracts):
    # (N, 3C) -> (N, 3H, hd) -> (3H, N, hd).  Kept in f32 through the
    # relayout for robust lowering; cast to bf16 at the slices below.
    qkv_hm = pltpu.einshape("nhd->hnd", qkv.reshape(N, 3 * H, hd))
    q = qkv_hm[:H].astype(jnp.bfloat16)          # (H, N, hd)
    k = qkv_hm[H:2 * H].astype(jnp.bfloat16)     # (H, N, hd)
    v = qkv_hm[2 * H:].astype(jnp.bfloat16)      # (H, N, hd)

    # batched over heads: MXU ops chain back-to-back, no per-head Python loop
    s = jnp.einsum("hqd,hkd->hqk", q, k,
                   preferred_element_type=jnp.float32)          # (H, N, N)
    s = s - jnp.max(s, axis=-1, keepdims=True)
    p = jnp.exp(s)                                              # unnormalized, f32
    l = jnp.sum(p, axis=-1, keepdims=True)                      # (H, N, 1)
    pv = jnp.einsum("hqk,hkd->hqd", p.astype(jnp.bfloat16), v,
                    preferred_element_type=jnp.float32)         # (H, N, hd)
    # normalization deferred past p@v; reciprocal goes to the EUP slot
    pv = (pv * pl.reciprocal(l, approx=True)).astype(jnp.bfloat16)

    # Head-concat folded into the projection: accumulate pv_h @ Wproj_h into
    # one f32 (N, C) accumulator — no VMEM scratch, no masked narrow stores.
    acc = jnp.dot(pv[0], wproj_hm_ref[0], preferred_element_type=jnp.float32)
    for h in range(1, H):
        acc = acc + jnp.dot(pv[h], wproj_hm_ref[h],
                            preferred_element_type=jnp.float32)
    attn = acc + bproj_ref[0]                                   # (N, C) f32

    x1 = x + attn                                # residual 1 (drop_path = identity)

    # ---- mlp branch ----
    xn2 = _layernorm(x1, ln2_w_ref[0], ln2_b_ref[0])
    h1 = jnp.dot(xn2.astype(jnp.bfloat16), w1_ref[...],
                 preferred_element_type=jnp.float32) + b1_ref[0]
    h1 = _gelu(h1)
    h2 = jnp.dot(h1.astype(jnp.bfloat16), w2_ref[...],
                 preferred_element_type=jnp.float32) + b2_ref[0]

    o_ref[0] = (x1 + h2).astype(o_ref.dtype)     # residual 2


# --------------------------- one-time weight prep ----------------------------

def prepare_block_params(params, num_heads):
    """Hoisted out of the forward pass: transpose nn.Linear weights to
    (in, out), fold the attention scale into the Q columns of wqkv, reshape
    the projection to head-major (H, hd, C), cast all matmul weight slabs to
    bf16, keep LN params / biases in f32."""
    C = params["wproj"].shape[0]
    hidden = params["w1"].shape[0]
    hd = C // num_heads
    scale = hd ** (-0.5)

    wqkv_t = params["wqkv"].T.astype(jnp.float32)            # (C, 3C)
    wqkv_t = wqkv_t.at[:, :C].multiply(scale)                 # fold softmax scale into Q
    wproj_hm = params["wproj"].T.reshape(num_heads, hd, C)    # (H, hd, C)
    return {
        "ln1_w": params["ln1_w"].reshape(1, C).astype(jnp.float32),
        "ln1_b": params["ln1_b"].reshape(1, C).astype(jnp.float32),
        "wqkv": wqkv_t.astype(jnp.bfloat16),                  # (C, 3C)
        "wproj_hm": wproj_hm.astype(jnp.bfloat16),            # (H, hd, C)
        "bproj": params["bproj"].reshape(1, C).astype(jnp.float32),
        "ln2_w": params["ln2_w"].reshape(1, C).astype(jnp.float32),
        "ln2_b": params["ln2_b"].reshape(1, C).astype(jnp.float32),
        "w1": params["w1"].T.astype(jnp.bfloat16),            # (C, hidden)
        "b1": params["b1"].reshape(1, hidden).astype(jnp.float32),
        "w2": params["w2"].T.astype(jnp.bfloat16),            # (hidden, C)
        "b2": params["b2"].reshape(1, C).astype(jnp.float32),
    }


# ------------------------------ VMEM budgeting -------------------------------

def _derive_vmem_limit(N, C, hidden, num_heads):
    """Per-generation VMEM limit: actual residency + headroom, clamped below
    the chip's physical VMEM (64 MiB on v7x, 128 MiB on v5e/v6e)."""
    bf, f = 2, 4
    hd = C // num_heads
    weights = bf * (C * 3 * C + num_heads * hd * C + C * hidden + hidden * C)
    scalars = f * (6 * C + hidden)
    io = 2 * 2 * f * N * C                           # x + out tiles, double-buffered
    inter = f * (2 * N * 3 * C                       # qkv + head-major relayout
                 + 2 * num_heads * N * N             # scores + exp
                 + num_heads * N * hd                # pv
                 + 2 * N * hidden                    # mlp hidden / gelu
                 + 4 * N * C)                        # residuals, LN temps, proj acc
    need = weights + scalars + io + inter + (6 << 20)   # Mosaic internal scratch
    try:
        phys = pltpu.get_tpu_info().vmem_capacity_bytes
    except Exception:
        phys = 64 << 20                              # conservative (v7x per-core)
    return int(max(32 << 20, min(need, phys - (8 << 20))))


# -------------------------------- wrapper -----------------------------------

def block_forward(x, prep, num_heads):
    B, N, C = x.shape
    hidden = prep["w1"].shape[1]
    hd = C // num_heads

    args = (
        x,
        prep["ln1_w"], prep["ln1_b"],
        prep["wqkv"],
        prep["wproj_hm"], prep["bproj"],
        prep["ln2_w"], prep["ln2_b"],
        prep["w1"], prep["b1"],
        prep["w2"], prep["b2"],
    )

    def const_spec(shape):
        # weight / bias slabs: constant block index across the grid and
        # fetched once -> single-buffer them (default double-buffering would
        # only double resident VMEM for data that never swaps).
        return pl.BlockSpec(shape, lambda b, _n=len(shape): (0,) * _n,
                            pipeline_mode=pl.Buffered(1))

    in_specs = [
        pl.BlockSpec((1, N, C), lambda b: (b, 0, 0)),
        const_spec((1, C)), const_spec((1, C)),
        const_spec((C, 3 * C)),
        const_spec((num_heads, hd, C)), const_spec((1, C)),
        const_spec((1, C)), const_spec((1, C)),
        const_spec((C, hidden)), const_spec((1, hidden)),
        const_spec((hidden, C)), const_spec((1, C)),
    ]

    kern = functools.partial(block_kernel, num_heads=num_heads)
    return pl.pallas_call(
        kern,
        out_shape=jax.ShapeDtypeStruct((B, N, C), x.dtype),
        grid=(B,),
        in_specs=in_specs,
        out_specs=pl.BlockSpec((1, N, C), lambda b: (b, 0, 0)),
        compiler_params=pltpu.CompilerParams(
            dimension_semantics=("parallel",),
            vmem_limit_bytes=_derive_vmem_limit(N, C, hidden, num_heads)),
    )(*args)


# ---------------------------- pure-JAX reference -----------------------------

def block_reference(x, params, num_heads):
    B, N, C = x.shape
    hd = C // num_heads
    scale = hd ** (-0.5)

    def ln(v, g, b):
        mu = jnp.mean(v, axis=-1, keepdims=True)
        var = jnp.mean(jnp.square(v - mu), axis=-1, keepdims=True)
        return (v - mu) / jnp.sqrt(var + 1e-5) * g + b

    xn = ln(x, params["ln1_w"], params["ln1_b"])
    qkv = xn @ params["wqkv"].T                                  # (B, N, 3C)
    qkv = qkv.reshape(B, N, 3, num_heads, hd).transpose(2, 0, 3, 1, 4)
    q, k, v = qkv[0], qkv[1], qkv[2]                             # (B, H, N, hd)
    attn = jnp.einsum("bhnd,bhmd->bhnm", q, k) * scale
    attn = jax.nn.softmax(attn, axis=-1)
    o = jnp.einsum("bhnm,bhmd->bhnd", attn, v)
    o = o.transpose(0, 2, 1, 3).reshape(B, N, C)
    o = o @ params["wproj"].T + params["bproj"]
    x1 = x + o

    xn2 = ln(x1, params["ln2_w"], params["ln2_b"])
    h1 = xn2 @ params["w1"].T + params["b1"]
    h1 = h1 * 0.5 * (1.0 + jax.lax.erf(h1 / math.sqrt(2.0)))
    h2 = h1 @ params["w2"].T + params["b2"]
    return x1 + h2


# ---------------------------------- main -------------------------------------

if __name__ == "__main__":
    B, N, C = 2, 16, 32
    num_heads = 4
    mlp_ratio = 4.0
    hidden = int(C * mlp_ratio)

    key = jax.random.PRNGKey(0)
    keys = jax.random.split(key, 6)

    params = {
        "ln1_w": jnp.ones((C,), jnp.float32),
        "ln1_b": jnp.zeros((C,), jnp.float32),
        "wqkv": 0.02 * jax.random.normal(keys[0], (3 * C, C), jnp.float32),
        "wproj": 0.02 * jax.random.normal(keys[1], (C, C), jnp.float32),
        "bproj": jnp.zeros((C,), jnp.float32),
        "ln2_w": jnp.ones((C,), jnp.float32),
        "ln2_b": jnp.zeros((C,), jnp.float32),
        "w1": 0.02 * jax.random.normal(keys[2], (hidden, C), jnp.float32),
        "b1": jnp.zeros((hidden,), jnp.float32),
        "w2": 0.02 * jax.random.normal(keys[3], (C, hidden), jnp.float32),
        "b2": jnp.zeros((C,), jnp.float32),
    }

    x = jax.random.normal(keys[4], (B, N, C), jnp.float32)

    # one-time weight preprocessing (outside the per-call forward path)
    prep = prepare_block_params(params, num_heads)

    out = block_forward(x, prep, num_heads)
    out = jax.block_until_ready(out)

    ref = block_reference(x, params, num_heads)
    assert out.shape == (B, N, C)
    # bf16 matmul operands + approx reciprocal -> loosened tolerance vs. f32 ref
    err = float(jnp.max(jnp.abs(out - ref)))
    assert err < 1e-2, err

    print("KERNEL_OK")
</pallas_src>

<mosaic_0001>
module attributes {stable_mosaic.version = 11 : i64} {
  func.func @block_kernel(%arg0: i32, %arg1: memref<1x16x32xf32, #tpu.memory_space<vmem>>, %arg2: memref<1x32xf32, #tpu.memory_space<vmem>>, %arg3: memref<1x32xf32, #tpu.memory_space<vmem>>, %arg4: memref<32x96xbf16, #tpu.memory_space<vmem>>, %arg5: memref<4x8x32xbf16, #tpu.memory_space<vmem>>, %arg6: memref<1x32xf32, #tpu.memory_space<vmem>>, %arg7: memref<1x32xf32, #tpu.memory_space<vmem>>, %arg8: memref<1x32xf32, #tpu.memory_space<vmem>>, %arg9: memref<32x128xbf16, #tpu.memory_space<vmem>>, %arg10: memref<1x128xf32, #tpu.memory_space<vmem>>, %arg11: memref<128x32xbf16, #tpu.memory_space<vmem>>, %arg12: memref<1x32xf32, #tpu.memory_space<vmem>>, %arg13: memref<1x16x32xf32, #tpu.memory_space<vmem>>) attributes {dimension_semantics = [#tpu.dimension_semantics<parallel>], iteration_bounds = array<i64: 2>, scalar_prefetch = 0 : i64, scratch_operands = 0 : i64, tpu.core_type = #tpu.core_type<tc>, window_params = [{transform_indices = @transform_0, window_bounds = array<i64: 1, 16, 32>}, {pipeline_mode = #tpu.pipeline_mode<synchronous>, transform_indices = @transform_1, window_bounds = array<i64: 1, 32>}, {pipeline_mode = #tpu.pipeline_mode<synchronous>, transform_indices = @transform_2, window_bounds = array<i64: 1, 32>}, {pipeline_mode = #tpu.pipeline_mode<synchronous>, transform_indices = @transform_3, window_bounds = array<i64: 32, 96>}, {pipeline_mode = #tpu.pipeline_mode<synchronous>, transform_indices = @transform_4, window_bounds = array<i64: 4, 8, 32>}, {pipeline_mode = #tpu.pipeline_mode<synchronous>, transform_indices = @transform_5, window_bounds = array<i64: 1, 32>}, {pipeline_mode = #tpu.pipeline_mode<synchronous>, transform_indices = @transform_6, window_bounds = array<i64: 1, 32>}, {pipeline_mode = #tpu.pipeline_mode<synchronous>, transform_indices = @transform_7, window_bounds = array<i64: 1, 32>}, {pipeline_mode = #tpu.pipeline_mode<synchronous>, transform_indices = @transform_8, window_bounds = array<i64: 32, 128>}, {pipeline_mode = #tpu.pipeline_mode<synchronous>, transform_indices = @transform_9, window_bounds = array<i64: 1, 128>}, {pipeline_mode = #tpu.pipeline_mode<synchronous>, transform_indices = @transform_10, window_bounds = array<i64: 128, 32>}, {pipeline_mode = #tpu.pipeline_mode<synchronous>, transform_indices = @transform_11, window_bounds = array<i64: 1, 32>}, {transform_indices = @transform_12, window_bounds = array<i64: 1, 16, 32>}]} {
    %c0 = arith.constant 0 : index
    %c0_0 = arith.constant 0 : index
    %c0_1 = arith.constant 0 : index
    %0 = vector.load %arg1[%c0, %c0_0, %c0_1] : memref<1x16x32xf32, #tpu.memory_space<vmem>>, vector<1x16x32xf32>
    %1 = vector.shape_cast %0 : vector<1x16x32xf32> to vector<16x32xf32>
    %c0_2 = arith.constant 0 : index
    %c0_3 = arith.constant 0 : index
    %2 = vector.load %arg2[%c0_2, %c0_3] : memref<1x32xf32, #tpu.memory_space<vmem>>, vector<1x32xf32>
    %3 = vector.shape_cast %2 : vector<1x32xf32> to vector<32xf32>
    %c0_4 = arith.constant 0 : index
    %c0_5 = arith.constant 0 : index
    %4 = vector.load %arg3[%c0_4, %c0_5] : memref<1x32xf32, #tpu.memory_space<vmem>>, vector<1x32xf32>
    %5 = vector.shape_cast %4 : vector<1x32xf32> to vector<32xf32>
    %cst = arith.constant dense<0.000000e+00> : vector<16xf32>
    %6 = vector.multi_reduction <add>, %1, %cst [1] : vector<16x32xf32> to vector<16xf32>
    %7 = vector.shape_cast %6 : vector<16xf32> to vector<16x1xf32>
    %cst_6 = arith.constant 3.200000e+01 : f32
    %8 = vector.broadcast %cst_6 : f32 to vector<16x1xf32>
    %9 = arith.divf %7, %8 : vector<16x1xf32>
    %10 = vector.broadcast %9 : vector<16x1xf32> to vector<16x32xf32>
    %11 = arith.subf %1, %10 : vector<16x32xf32>
    %12 = arith.mulf %11, %11 : vector<16x32xf32>
    %cst_7 = arith.constant dense<0.000000e+00> : vector<16xf32>
    %13 = vector.multi_reduction <add>, %12, %cst_7 [1] : vector<16x32xf32> to vector<16xf32>
    %14 = vector.shape_cast %13 : vector<16xf32> to vector<16x1xf32>
    %cst_8 = arith.constant 3.200000e+01 : f32
    %15 = vector.broadcast %cst_8 : f32 to vector<16x1xf32>
    %16 = arith.divf %14, %15 : vector<16x1xf32>
    %17 = vector.broadcast %9 : vector<16x1xf32> to vector<16x32xf32>
    %18 = arith.subf %1, %17 : vector<16x32xf32>
    %cst_9 = arith.constant 9.99999974E-6 : f32
    %19 = vector.broadcast %cst_9 : f32 to vector<16x1xf32>
    %20 = arith.addf %16, %19 : vector<16x1xf32>
    %21 = math.rsqrt %20 : vector<16x1xf32>
    %22 = vector.broadcast %21 : vector<16x1xf32> to vector<16x32xf32>
    %23 = arith.mulf %18, %22 : vector<16x32xf32>
    %24 = vector.shape_cast %3 : vector<32xf32> to vector<1x32xf32>
    %25 = vector.broadcast %24 : vector<1x32xf32> to vector<16x32xf32>
    %26 = arith.mulf %23, %25 : vector<16x32xf32>
    %27 = vector.shape_cast %5 : vector<32xf32> to vector<1x32xf32>
    %28 = vector.broadcast %27 : vector<1x32xf32> to vector<16x32xf32>
    %29 = arith.addf %26, %28 : vector<16x32xf32>
    %30 = arith.truncf %29 : vector<16x32xf32> to vector<16x32xbf16>
    %c0_10 = arith.constant 0 : index
    %c0_11 = arith.constant 0 : index
    %31 = vector.load %arg4[%c0_10, %c0_11] : memref<32x96xbf16, #tpu.memory_space<vmem>>, vector<32x96xbf16>
    %cst_12 = arith.constant dense<0.000000e+00> : vector<16x96xf32>
    %32 = tpu.matmul %30, %31, %cst_12 {dimension_numbers = #tpu.dot_dimension_numbers<[1], [0], [0], [1], [0, 0, 1, 1], [], []>} : vector<16x32xbf16>, vector<32x96xbf16>, vector<16x96xf32> -> vector<16x96xf32>
    %33 = vector.shape_cast %32 : vector<16x96xf32> to vector<16x12x8xf32>
    %34 = tpu.transpose %33, [1, 0, 2] : vector<16x12x8xf32> -> vector<12x16x8xf32>
    %35 = vector.extract_strided_slice %34 {offsets = [0, 0, 0], sizes = [4, 16, 8], strides = [1, 1, 1]} : vector<12x16x8xf32> to vector<4x16x8xf32>
    %36 = arith.truncf %35 : vector<4x16x8xf32> to vector<4x16x8xbf16>
    %37 = vector.extract_strided_slice %34 {offsets = [4, 0, 0], sizes = [4, 16, 8], strides = [1, 1, 1]} : vector<12x16x8xf32> to vector<4x16x8xf32>
    %38 = arith.truncf %37 : vector<4x16x8xf32> to vector<4x16x8xbf16>
    %39 = vector.extract_strided_slice %34 {offsets = [8, 0, 0], sizes = [4, 16, 8], strides = [1, 1, 1]} : vector<12x16x8xf32> to vector<4x16x8xf32>
    %40 = arith.truncf %39 : vector<4x16x8xf32> to vector<4x16x8xbf16>
    "tpu.trace_start"() <{level = 10 : i32, message = "hqd,hkd->hqk"}> : () -> ()
    %cst_13 = arith.constant dense<0.000000e+00> : vector<4x16x16xf32>
    %41 = tpu.matmul %36, %38, %cst_13 {dimension_numbers = #tpu.dot_dimension_numbers<[2], [2], [1], [1], [0, 0, 0, 1, 1, 1], [0], [0]>} : vector<4x16x8xbf16>, vector<4x16x8xbf16>, vector<4x16x16xf32> -> vector<4x16x16xf32>
    "tpu.trace_stop"() : () -> ()
    %cst_14 = arith.constant dense<0xFF800000> : vector<4x16xf32>
    %42 = vector.multi_reduction <maximumf>, %41, %cst_14 [2] : vector<4x16x16xf32> to vector<4x16xf32>
    %43 = vector.shape_cast %42 : vector<4x16xf32> to vector<4x16x1xf32>
    %44 = vector.broadcast %43 : vector<4x16x1xf32> to vector<4x16x16xf32>
    %45 = arith.subf %41, %44 : vector<4x16x16xf32>
    %46 = math.exp %45 : vector<4x16x16xf32>
    %cst_15 = arith.constant dense<0.000000e+00> : vector<4x16xf32>
    %47 = vector.multi_reduction <add>, %46, %cst_15 [2] : vector<4x16x16xf32> to vector<4x16xf32>
    %48 = vector.shape_cast %47 : vector<4x16xf32> to vector<4x16x1xf32>
    %49 = arith.truncf %46 : vector<4x16x16xf32> to vector<4x16x16xbf16>
    "tpu.trace_start"() <{level = 10 : i32, message = "hqk,hkd->hqd"}> : () -> ()
    %cst_16 = arith.constant dense<0.000000e+00> : vector<4x16x8xf32>
    %50 = tpu.matmul %49, %40, %cst_16 {dimension_numbers = #tpu.dot_dimension_numbers<[2], [1], [1], [2], [0, 0, 0, 1, 1, 2], [0], [0]>} : vector<4x16x16xbf16>, vector<4x16x8xbf16>, vector<4x16x8xf32> -> vector<4x16x8xf32>
    "tpu.trace_stop"() : () -> ()
    %51 = tpu.reciprocal %48 {approx = true} : vector<4x16x1xf32> -> vector<4x16x1xf32>
    %52 = vector.broadcast %51 : vector<4x16x1xf32> to vector<4x16x8xf32>
    %53 = arith.mulf %50, %52 : vector<4x16x8xf32>
    %54 = arith.truncf %53 : vector<4x16x8xf32> to vector<4x16x8xbf16>
    %55 = vector.extract_strided_slice %54 {offsets = [0, 0, 0], sizes = [1, 16, 8], strides = [1, 1, 1]} : vector<4x16x8xbf16> to vector<1x16x8xbf16>
    %56 = vector.shape_cast %55 : vector<1x16x8xbf16> to vector<16x8xbf16>
    %c0_17 = arith.constant 0 : index
    %c0_18 = arith.constant 0 : index
    %c0_19 = arith.constant 0 : index
    %57 = vector.load %arg5[%c0_17, %c0_18, %c0_19] : memref<4x8x32xbf16, #tpu.memory_space<vmem>>, vector<1x8x32xbf16>
    %58 = vector.shape_cast %57 : vector<1x8x32xbf16> to vector<8x32xbf16>
    %cst_20 = arith.constant dense<0.000000e+00> : vector<16x32xf32>
    %59 = tpu.matmul %56, %58, %cst_20 {dimension_numbers = #tpu.dot_dimension_numbers<[1], [0], [0], [1], [0, 0, 1, 1], [], []>} : vector<16x8xbf16>, vector<8x32xbf16>, vector<16x32xf32> -> vector<16x32xf32>
    %60 = vector.extract_strided_slice %54 {offsets = [1, 0, 0], sizes = [1, 16, 8], strides = [1, 1, 1]} : vector<4x16x8xbf16> to vector<1x16x8xbf16>
    %61 = vector.shape_cast %60 : vector<1x16x8xbf16> to vector<16x8xbf16>
    %c1 = arith.constant 1 : index
    %c0_21 = arith.constant 0 : index
    %c0_22 = arith.constant 0 : index
    %62 = vector.load %arg5[%c1, %c0_21, %c0_22] : memref<4x8x32xbf16, #tpu.memory_space<vmem>>, vector<1x8x32xbf16>
    %63 = vector.shape_cast %62 : vector<1x8x32xbf16> to vector<8x32xbf16>
    %cst_23 = arith.constant dense<0.000000e+00> : vector<16x32xf32>
    %64 = tpu.matmul %61, %63, %cst_23 {dimension_numbers = #tpu.dot_dimension_numbers<[1], [0], [0], [1], [0, 0, 1, 1], [], []>} : vector<16x8xbf16>, vector<8x32xbf16>, vector<16x32xf32> -> vector<16x32xf32>
    %65 = arith.addf %59, %64 : vector<16x32xf32>
    %66 = vector.extract_strided_slice %54 {offsets = [2, 0, 0], sizes = [1, 16, 8], strides = [1, 1, 1]} : vector<4x16x8xbf16> to vector<1x16x8xbf16>
    %67 = vector.shape_cast %66 : vector<1x16x8xbf16> to vector<16x8xbf16>
    %c2 = arith.constant 2 : index
    %c0_24 = arith.constant 0 : index
    %c0_25 = arith.constant 0 : index
    %68 = vector.load %arg5[%c2, %c0_24, %c0_25] : memref<4x8x32xbf16, #tpu.memory_space<vmem>>, vector<1x8x32xbf16>
    %69 = vector.shape_cast %68 : vector<1x8x32xbf16> to vector<8x32xbf16>
    %cst_26 = arith.constant dense<0.000000e+00> : vector<16x32xf32>
    %70 = tpu.matmul %67, %69, %cst_26 {dimension_numbers = #tpu.dot_dimension_numbers<[1], [0], [0], [1], [0, 0, 1, 1], [], []>} : vector<16x8xbf16>, vector<8x32xbf16>, vector<16x32xf32> -> vector<16x32xf32>
    %71 = arith.addf %65, %70 : vector<16x32xf32>
    %72 = vector.extract_strided_slice %54 {offsets = [3, 0, 0], sizes = [1, 16, 8], strides = [1, 1, 1]} : vector<4x16x8xbf16> to vector<1x16x8xbf16>
    %73 = vector.shape_cast %72 : vector<1x16x8xbf16> to vector<16x8xbf16>
    %c3 = arith.constant 3 : index
    %c0_27 = arith.constant 0 : index
    %c0_28 = arith.constant 0 : index
    %74 = vector.load %arg5[%c3, %c0_27, %c0_28] : memref<4x8x32xbf16, #tpu.memory_space<vmem>>, vector<1x8x32xbf16>
    %75 = vector.shape_cast %74 : vector<1x8x32xbf16> to vector<8x32xbf16>
    %cst_29 = arith.constant dense<0.000000e+00> : vector<16x32xf32>
    %76 = tpu.matmul %73, %75, %cst_29 {dimension_numbers = #tpu.dot_dimension_numbers<[1], [0], [0], [1], [0, 0, 1, 1], [], []>} : vector<16x8xbf16>, vector<8x32xbf16>, vector<16x32xf32> -> vector<16x32xf32>
    %77 = arith.addf %71, %76 : vector<16x32xf32>
    %c0_30 = arith.constant 0 : index
    %c0_31 = arith.constant 0 : index
    %78 = vector.load %arg6[%c0_30, %c0_31] : memref<1x32xf32, #tpu.memory_space<vmem>>, vector<1x32xf32>
    %79 = vector.shape_cast %78 : vector<1x32xf32> to vector<32xf32>
    %80 = vector.shape_cast %79 : vector<32xf32> to vector<1x32xf32>
    %81 = vector.broadcast %80 : vector<1x32xf32> to vector<16x32xf32>
    %82 = arith.addf %77, %81 : vector<16x32xf32>
    %83 = arith.addf %1, %82 : vector<16x32xf32>
    %c0_32 = arith.constant 0 : index
    %c0_33 = arith.constant 0 : index
    %84 = vector.load %arg7[%c0_32, %c0_33] : memref<1x32xf32, #tpu.memory_space<vmem>>, vector<1x32xf32>
    %85 = vector.shape_cast %84 : vector<1x32xf32> to vector<32xf32>
    %c0_34 = arith.constant 0 : index
    %c0_35 = arith.constant 0 : index
    %86 = vector.load %arg8[%c0_34, %c0_35] : memref<1x32xf32, #tpu.memory_space<vmem>>, vector<1x32xf32>
    %87 = vector.shape_cast %86 : vector<1x32xf32> to vector<32xf32>
    %cst_36 = arith.constant dense<0.000000e+00> : vector<16xf32>
    %88 = vector.multi_reduction <add>, %83, %cst_36 [1] : vector<16x32xf32> to vector<16xf32>
    %89 = vector.shape_cast %88 : vector<16xf32> to vector<16x1xf32>
    %cst_37 = arith.constant 3.200000e+01 : f32
    %90 = vector.broadcast %cst_37 : f32 to vector<16x1xf32>
    %91 = arith.divf %89, %90 : vector<16x1xf32>
    %92 = vector.broadcast %91 : vector<16x1xf32> to vector<16x32xf32>
    %93 = arith.subf %83, %92 : vector<16x32xf32>
    %94 = arith.mulf %93, %93 : vector<16x32xf32>
    %cst_38 = arith.constant dense<0.000000e+00> : vector<16xf32>
    %95 = vector.multi_reduction <add>, %94, %cst_38 [1] : vector<16x32xf32> to vector<16xf32>
    %96 = vector.shape_cast %95 : vector<16xf32> to vector<16x1xf32>
    %cst_39 = arith.constant 3.200000e+01 : f32
    %97 = vector.broadcast %cst_39 : f32 to vector<16x1xf32>
    %98 = arith.divf %96, %97 : vector<16x1xf32>
    %99 = vector.broadcast %91 : vector<16x1xf32> to vector<16x32xf32>
    %100 = arith.subf %83, %99 : vector<16x32xf32>
    %cst_40 = arith.constant 9.99999974E-6 : f32
    %101 = vector.broadcast %cst_40 : f32 to vector<16x1xf32>
    %102 = arith.addf %98, %101 : vector<16x1xf32>
    %103 = math.rsqrt %102 : vector<16x1xf32>
    %104 = vector.broadcast %103 : vector<16x1xf32> to vector<16x32xf32>
    %105 = arith.mulf %100, %104 : vector<16x32xf32>
    %106 = vector.shape_cast %85 : vector<32xf32> to vector<1x32xf32>
    %107 = vector.broadcast %106 : vector<1x32xf32> to vector<16x32xf32>
    %108 = arith.mulf %105, %107 : vector<16x32xf32>
    %109 = vector.shape_cast %87 : vector<32xf32> to vector<1x32xf32>
    %110 = vector.broadcast %109 : vector<1x32xf32> to vector<16x32xf32>
    %111 = arith.addf %108, %110 : vector<16x32xf32>
    %112 = arith.truncf %111 : vector<16x32xf32> to vector<16x32xbf16>
    %c0_41 = arith.constant 0 : index
    %c0_42 = arith.constant 0 : index
    %113 = vector.load %arg9[%c0_41, %c0_42] : memref<32x128xbf16, #tpu.memory_space<vmem>>, vector<32x128xbf16>
    %cst_43 = arith.constant dense<0.000000e+00> : vector<16x128xf32>
    %114 = tpu.matmul %112, %113, %cst_43 {dimension_numbers = #tpu.dot_dimension_numbers<[1], [0], [0], [1], [0, 0, 1, 1], [], []>} : vector<16x32xbf16>, vector<32x128xbf16>, vector<16x128xf32> -> vector<16x128xf32>
    %c0_44 = arith.constant 0 : index
    %c0_45 = arith.constant 0 : index
    %115 = vector.load %arg10[%c0_44, %c0_45] : memref<1x128xf32, #tpu.memory_space<vmem>>, vector<1x128xf32>
    %116 = vector.shape_cast %115 : vector<1x128xf32> to vector<128xf32>
    %117 = vector.shape_cast %116 : vector<128xf32> to vector<1x128xf32>
    %118 = vector.broadcast %117 : vector<1x128xf32> to vector<16x128xf32>
    %119 = arith.addf %114, %118 : vector<16x128xf32>
    %cst_46 = arith.constant 5.000000e-01 : f32
    %120 = vector.broadcast %cst_46 : f32 to vector<16x128xf32>
    %121 = arith.mulf %119, %120 : vector<16x128xf32>
    %cst_47 = arith.constant 0.707106769 : f32
    %122 = vector.broadcast %cst_47 : f32 to vector<16x128xf32>
    %123 = arith.mulf %119, %122 : vector<16x128xf32>
    %124 = math.erf %123 : vector<16x128xf32>
    %cst_48 = arith.constant 1.000000e+00 : f32
    %125 = vector.broadcast %cst_48 : f32 to vector<16x128xf32>
    %126 = arith.addf %125, %124 : vector<16x128xf32>
    %127 = arith.mulf %121, %126 : vector<16x128xf32>
    %128 = arith.truncf %127 : vector<16x128xf32> to vector<16x128xbf16>
    %c0_49 = arith.constant 0 : index
    %c0_50 = arith.constant 0 : index
    %129 = vector.load %arg11[%c0_49, %c0_50] : memref<128x32xbf16, #tpu.memory_space<vmem>>, vector<128x32xbf16>
    %cst_51 = arith.constant dense<0.000000e+00> : vector<16x32xf32>
    %130 = tpu.matmul %128, %129, %cst_51 {dimension_numbers = #tpu.dot_dimension_numbers<[1], [0], [0], [1], [0, 0, 1, 1], [], []>} : vector<16x128xbf16>, vector<128x32xbf16>, vector<16x32xf32> -> vector<16x32xf32>
    %c0_52 = arith.constant 0 : index
    %c0_53 = arith.constant 0 : index
    %131 = vector.load %arg12[%c0_52, %c0_53] : memref<1x32xf32, #tpu.memory_space<vmem>>, vector<1x32xf32>
    %132 = vector.shape_cast %131 : vector<1x32xf32> to vector<32xf32>
    %133 = vector.shape_cast %132 : vector<32xf32> to vector<1x32xf32>
    %134 = vector.broadcast %133 : vector<1x32xf32> to vector<16x32xf32>
    %135 = arith.addf %130, %134 : vector<16x32xf32>
    %136 = arith.addf %83, %135 : vector<16x32xf32>
    %c0_54 = arith.constant 0 : index
    %c0_55 = arith.constant 0 : index
    %c0_56 = arith.constant 0 : index
    %137 = vector.load %arg13[%c0_54, %c0_55, %c0_56] : memref<1x16x32xf32, #tpu.memory_space<vmem>>, vector<1x16x32xf32>
    %138 = vector.shape_cast %137 : vector<1x16x32xf32> to vector<16x32xf32>
    %139 = vector.shape_cast %136 : vector<16x32xf32> to vector<1x16x32xf32>
    tpu.vector_store %arg13[%c0_54, %c0_55, %c0_56], %139 {strides = array<i32>} : memref<1x16x32xf32, #tpu.memory_space<vmem>>, vector<1x16x32xf32>,
    return
  }
  func.func @transform_0(%arg0: i32) -> (i32, i32, i32) {
    %c0_i32 = arith.constant 0 : i32
    %c0_i32_0 = arith.constant 0 : i32
    %c0_i32_1 = arith.constant 0 : i32
    return %arg0, %c0_i32, %c0_i32_0 : i32, i32, i32
  }
  func.func @transform_1(%arg0: i32) -> (i32, i32) {
    %c0_i32 = arith.constant 0 : i32
    %c0_i32_0 = arith.constant 0 : i32
    %c0_i32_1 = arith.constant 0 : i32
    return %c0_i32, %c0_i32_0 : i32, i32
  }
  func.func @transform_2(%arg0: i32) -> (i32, i32) {
    %c0_i32 = arith.constant 0 : i32
    %c0_i32_0 = arith.constant 0 : i32
    %c0_i32_1 = arith.constant 0 : i32
    return %c0_i32, %c0_i32_0 : i32, i32
  }
  func.func @transform_3(%arg0: i32) -> (i32, i32) {
    %c0_i32 = arith.constant 0 : i32
    %c0_i32_0 = arith.constant 0 : i32
    %c0_i32_1 = arith.constant 0 : i32
    return %c0_i32, %c0_i32_0 : i32, i32
  }
  func.func @transform_4(%arg0: i32) -> (i32, i32, i32) {
    %c0_i32 = arith.constant 0 : i32
    %c0_i32_0 = arith.constant 0 : i32
    %c0_i32_1 = arith.constant 0 : i32
    %c0_i32_2 = arith.constant 0 : i32
    return %c0_i32, %c0_i32_0, %c0_i32_1 : i32, i32, i32
  }
  func.func @transform_5(%arg0: i32) -> (i32, i32) {
    %c0_i32 = arith.constant 0 : i32
    %c0_i32_0 = arith.constant 0 : i32
    %c0_i32_1 = arith.constant 0 : i32
    return %c0_i32, %c0_i32_0 : i32, i32
  }
  func.func @transform_6(%arg0: i32) -> (i32, i32) {
    %c0_i32 = arith.constant 0 : i32
    %c0_i32_0 = arith.constant 0 : i32
    %c0_i32_1 = arith.constant 0 : i32
    return %c0_i32, %c0_i32_0 : i32, i32
  }
  func.func @transform_7(%arg0: i32) -> (i32, i32) {
    %c0_i32 = arith.constant 0 : i32
    %c0_i32_0 = arith.constant 0 : i32
    %c0_i32_1 = arith.constant 0 : i32
    return %c0_i32, %c0_i32_0 : i32, i32
  }
  func.func @transform_8(%arg0: i32) -> (i32, i32) {
    %c0_i32 = arith.constant 0 : i32
    %c0_i32_0 = arith.constant 0 : i32
    %c0_i32_1 = arith.constant 0 : i32
    return %c0_i32, %c0_i32_0 : i32, i32
  }
  func.func @transform_9(%arg0: i32) -> (i32, i32) {
    %c0_i32 = arith.constant 0 : i32
    %c0_i32_0 = arith.constant 0 : i32
    %c0_i32_1 = arith.constant 0 : i32
    return %c0_i32, %c0_i32_0 : i32, i32
  }
  func.func @transform_10(%arg0: i32) -> (i32, i32) {
    %c0_i32 = arith.constant 0 : i32
    %c0_i32_0 = arith.constant 0 : i32
    %c0_i32_1 = arith.constant 0 : i32
    return %c0_i32, %c0_i32_0 : i32, i32
  }
  func.func @transform_11(%arg0: i32) -> (i32, i32) {
    %c0_i32 = arith.constant 0 : i32
    %c0_i32_0 = arith.constant 0 : i32
    %c0_i32_1 = arith.constant 0 : i32
    return %c0_i32, %c0_i32_0 : i32, i32
  }
  func.func @transform_12(%arg0: i32) -> (i32, i32, i32) {
    %c0_i32 = arith.constant 0 : i32
    %c0_i32_0 = arith.constant 0 : i32
    %c0_i32_1 = arith.constant 0 : i32
    return %arg0, %c0_i32, %c0_i32_0 : i32, i32, i32
  }
}

</mosaic_0001>

<bundles_post_ra>
// kernel: tpu_custom_call.1
= control target key start
LH: loop header
LB: loop body
LE: loop exit
PB: predicated region body
PF: predicated region fallthrough
CT: control target
= control target key end

     0   :  { %s3354_s0 = inlined_call_operand.vmem [shape: f32[2,16,32], index: 0, kind: input, shape index: {}]   ;;  %s3355_s1 = inlined_call_operand.vmem [shape: f32[1,32], index: 1, kind: input, shape index: {}]   ;;  %s3356_s2 = inlined_call_operand.vmem [shape: f32[1,32], index: 2, kind: input, shape index: {}]   ;;  %s3357_s3 = inlined_call_operand.vmem [shape: bf16[32,96], index: 3, kind: input, shape index: {}]   ;;  %s3358_s4 = inlined_call_operand.vmem [shape: bf16[4,8,32], index: 4, kind: input, shape index: {}]   ;;  %s3359_s5 = inlined_call_operand.vmem [shape: f32[1,32], index: 5, kind: input, shape index: {}]   ;;  %s3360_s6 = inlined_call_operand.vmem [shape: f32[1,32], index: 6, kind: input, shape index: {}]   ;;  %s3361_s7 = inlined_call_operand.vmem [shape: f32[1,32], index: 7, kind: input, shape index: {}]   ;;  %s3362_s8 = inlined_call_operand.vmem [shape: bf16[32,128], index: 8, kind: input, shape index: {}]   ;;  %s3363_s9 = inlined_call_operand.vmem [shape: f32[1,128], index: 9, kind: input, shape index: {}]   ;;  %s3364_s10 = inlined_call_operand.vmem [shape: bf16[128,32], index: 10, kind: input, shape index: {}]   ;;  %s3365_s11 = inlined_call_operand.vmem [shape: f32[1,32], index: 11, kind: input, shape index: {}]   ;;  %s3366_s12 = inlined_call_operand.hbm [shape: f32[2,16,32], index: 12, kind: output, shape index: {}]  }
   0x1   :  { %3367 = sst [smem:[#allocation5_spill]] %s3354_s0 }
   0x2   :  { %17 = vsyncpa [#allocation3], 0 }
   0x3   :  { %19 = vsyncpa [#allocation3 + $0x1], 0  ;;  %s2884_s21 = smov 0   ;;  %s2886_s22 = smov 0  }
   0x4   :  { %s2888_s23 = smov 0   ;;  %s2890_s24 = smov 0  }
   0x5 LB: > { %s2905_s25 = sadd.s32 4294967295, %s2799_s24   ;;  %s2406_s26 = sadd.s32 4294967294, %s2799_s24   ;;  %s2799_s24 = sphi %s2890_s24, %s3374_s24   ;;  %s2795_s23 = sphi %s2888_s23, %s3373_s23   ;;  %s2791_s22 = sphi %s2886_s22, %s3372_s22   ;;  %s2787_s21 = sphi %s2884_s21, %s3371_s21  }
   0x6   : > { %s2909_s27 = sadd.s32 1, %s2799_s24   ;;  %s289_s28 = sadd.s32 1, %s2795_s23 }
   0x7   : > { %s286_s29 = ssub.s32 %s2799_s24, %s2909_s27  ;;  %p299_p0 = scmp.ne.s32.totalorder %s2795_s23, %s2791_s22 }
   0x8   : > { %p287_p1 = scmp.eq.s32.totalorder %s286_s29, 0  ;;  %p300_p2 = scmp.eq.s32.totalorder %s2905_s25, 1 }
   0x9   : > { %p305_p3 = scmp.ne.s32.totalorder %s2791_s22, %s2787_s21  ;;  %p306_p4 = scmp.eq.s32.totalorder %s2406_s26, 1 }
   0xa   : > { %s2920_s30 = scalar_select %p287_p1, %s2795_s23, %s289_s28  }
   0xb   : > { %p2922_p5 = por %p300_p2, %p299_p0  ;;  %p2926_p6 = por %p306_p4, %p305_p3 }
   0xc   : > { %p2409_p7 = scmp.ge.s32.totalorder %s2799_s24, 1  ;;  %p365_p8 = scmp.lt.s32.totalorder %s2799_s24, 3 }
   0xe   : > { %p366_p9 = pnand %p2409_p7, %p365_p8 }
   0xf   : > { %p407_p10 = scmp.lt.s32.totalorder (!%p366_p9), %s2905_s25, 1  ;;  %vm417_vm0 = vcmask (!%p366_p9), 261120   ;;  %s3370_s0 = sld [smem:[#allocation5_spill]] (!%p366_p9)  ;;  %v2679_v14 = vld [vmem:[%s3357_s3] sm:$0xff] (!%p366_p9)   ;;  %v2801_v15 = vmov (!%p366_p9), 0.0   ;;  %v2680_v16 = vld [vmem:[%s3357_s3 + $0x8] sm:$0xff] (!%p366_p9)   ;;  %v595_v42 = vlaneseq (!%p366_p9) }
  0x10   : > { %369 = sbr.rel (%p366_p9) target bundleno = 2374 (0x946), region = 68  ;;  %2515 = vmatprep.subr.bf16.mxu1 (!%p366_p9), %v2801_v15  ;;  %2541 = vmatprep.subr.bf16.mxu0 (!%p366_p9), %v2801_v15  ;;  %vm2802_vm1 = vmmov (!%p366_p9), 0   ;;  %v2413_v25 = vld [vmem:[%s3355_s1] ss:$0 sm:$0xff] (!%p366_p9)  ;;  %s2803_s20 = smov (!%p366_p9), 88   ;;  %vm1418_vm2 = vcmask (!%p366_p9), 64512  }
  0x11   : > { %2516 = vmatpush3.bf16.msra.mxu1 (!%p366_p9), %v2679_v14  ;;  %2519 = vmatprep.mubr.msk.bf16.mxu1 (!%p366_p9), %vm2802_vm1, %v2801_v15  ;;  %v2414_v29 = vld [vmem:[%s3356_s2] ss:$0 sm:$0xff] (!%p366_p9)  ;;  %s2804_s26 = smov (!%p366_p9), 96   ;;  %s2805_s28 = smov (!%p366_p9), 80   ;;  %v2814_v40 = vmov (!%p366_p9), 1983009808  }
  0x12   : > { %2517 = vmatprep.subr.bf16.mxu1 (!%p366_p9), %v2801_v15  ;;  %2543 = vmatprep.mubr.msk.bf16.mxu0 (!%p366_p9), %vm2802_vm1, %v2801_v15  ;;  %s2806_s29 = smov (!%p366_p9), 72   ;;  %s2809_s17 = smov (!%p366_p9), 104   ;;  %v593_v41 = vunpack.c.l.s4 (!%p366_p9), %v2814_v40  ;;  %v596_v46 = vshrl.u32 (!%p366_p9), %v595_v42, 7  ;;  %v2815_v49 = vmov (!%p366_p9), 1934713408   ;;  %vm1607_vm3 = vcmask (!%p366_p9), 130048  }
  0x13   : > { %s2810_s18 = smov (!%p366_p9), 64   ;;  %v657_v50 = vunpack.c.l.s4 (!%p366_p9), %v2815_v49  ;;  %vm1886_vm4 = vcmask (!%p366_p9), 1043456  }
  0x14   : > { %v594_v45 = vunpack.c.0.s8 (!%p366_p9), %v593_v41 }
  0x15   : > { %2518 = vmatpush3.bf16.msra.mxu1 (!%p366_p9), %v2680_v16  ;;  %v658_v58 = vunpack.c.0.s8 (!%p366_p9), %v657_v50 }
  0x16   : > { %2523 = vmatprep.subr.bf16.mxu1 (!%p366_p9), %v2801_v15  ;;  %v2994_v52 = vsub.s32 (!%p366_p9), %v594_v45, %v596_v46 }
  0x17   : > { %s408_s15 = scalar_select %p407_p10, %s2905_s25, 1 }
  0x19   : > { %s2474_s16 = sshll.u32 %s408_s15, 4  ;;  %s2807_s15 = smov 120  }
  0x1a   : > { %s2937_s19 = scalar_lea.vmem %s3370_s0, %s2474_s16  ;;  %s2808_s16 = smov 112  }
  0x1b   : > { %v413_v0 = vld [vmem:[%s2937_s19] sm:$0xff]  ;;  %v414_v1 = vld [vmem:[%s2937_s19 + $0x8] sm:$0xff] }
  0x1c   : > { %v418_v2 = vsel %vm417_vm0, %v413_v0, 0.0  ;;  %v421_v3 = vsel %vm417_vm0, %v414_v1, 0.0 }
  0x1d   : > { %419 = vadd.xlane.f32.xlu0 %v418_v2 }
  0x21   : > { %422 = vadd.xlane.f32.xlu0 %v421_v3  ;;  %v3000_v3 = vsub.s32 %v658_v58, %v596_v46 }
  0xaa   : > { %v420_v4 = vpop.xlane.xlu0 %419 }
  0xab   : > { %v425_v5 = vmul.f32 0.03125, %v420_v4 }
  0xad   : > { %v427_v6 = vsub.f32 %v413_v0, %v425_v5 }
  0xae   : > { %v423_v7 = vpop.xlane.xlu0 %422 }
  0xaf   : > { %v426_v8 = vmul.f32 0.03125, %v423_v7  ;;  %v429_v9 = vmul.f32 %v427_v6, %v427_v6 }
  0xb1   : > { %v428_v10 = vsub.f32 %v414_v1, %v426_v8  ;;  %v431_v11 = vsel %vm417_vm0, %v429_v9, 0.0 }
  0xb2   : > { %432 = vadd.xlane.f32.xlu1 %v431_v11 }
  0xb3   : > { %v430_v12 = vmul.f32 %v428_v10, %v428_v10 }
  0xb5   : > { %v434_v13 = vsel %vm417_vm0, %v430_v12, 0.0 }
  0xb6   : > { %435 = vadd.xlane.f32.xlu1 %v434_v13 }
 0x13f   : > { %v433_v17 = vpop.xlane.xlu1 %432 }
 0x140   : > { %v437_v18 = vmul.f32 0.03125, %v433_v17 }
 0x142   : > { %v439_v19 = vadd.f32 1e-05, %v437_v18 }
 0x143   : > { %v436_v20 = vpop.xlane.xlu1 %435 }
 0x144   : > { %2691 = vrsqrt.f32 %v439_v19  ;;  %v438_v21 = vmul.f32 0.03125, %v436_v20 }
 0x146   : > { %v440_v22 = vadd.f32 1e-05, %v438_v21 }
 0x148   : > { %2693 = vrsqrt.f32 %v440_v22 }
 0x14e   : > { %v2692_v23 = vpop.eup %2691 }
 0x14f   : > { %v443_v24 = vmul.f32 %v2692_v23, %v427_v6 }
 0x151   : > { %v451_v28 = vmul.f32 %v2413_v25, %v443_v24 }
 0x152   : > { %v2694_v26 = vpop.eup %2693 }
 0x153   : > { %v444_v27 = vmul.f32 %v2694_v26, %v428_v10  ;;  %v459_v31 = vadd.f32 %v2414_v29, %v451_v28 }
 0x155   : > { %v452_v30 = vmul.f32 %v2413_v25, %v444_v27 }
 0x157   : > { %v460_v32 = vadd.f32 %v2414_v29, %v452_v30 }
 0x159   : > { %v461_v33 = vpack.c.bf16 %v460_v32, %v459_v31 }
 0x15b   : > { %2520 = vmatmul.mubr.msk.bf16.vlgmr.msra.gmra.mrb[0].mxu1 %vm417_vm0, %v461_v33 }
 0x15c   : > { %2525 = vmatprep.mubr.msk.bf16.mxu1 %vm2802_vm1, %v2801_v15 }
 0x22e   : > { %v2968_v34 = vpop.f32.mrb[0].mxu1 }
 0x22f   : > { %548 = vrot.lane.b32.xlu1 %v2968_v34, %s2803_s20  ;;  %542 = vrot.lane.b32.xlu0 %v2968_v34, %s2804_s26  ;;  %v2521_v35 = vpop.f32.mrb[1].mxu1 }
 0x230   : > { %v2972_v36 = vpop.f32.mrb[2].mxu1 }
 0x231   : > { %v2522_v37 = vpop.f32.mrb[3].mxu1 }
 0x233   : > { %554 = vrot.lane.b32.xlu0 %v2968_v34, %s2805_s28  ;;  %544 = vrot.lane.b32.xlu1 %v2972_v36, %s2804_s26  ;;  %s2812_s26 = smov 40  }
 0x237   : > { %560 = vrot.lane.b32.xlu0 %v2968_v34, %s2806_s29  ;;  %550 = vrot.lane.b32.xlu1 %v2972_v36, %s2803_s20  ;;  %s2811_s20 = smov 48  }
 0x23b   : > { %524 = vrot.lane.b32.xlu0 %v2968_v34, %s2807_s15  ;;  %556 = vrot.lane.b32.xlu1 %v2972_v36, %s2805_s28  ;;  %s2813_s28 = smov 56  }
 0x23f   : > { %530 = vrot.lane.b32.xlu0 %v2968_v34, %s2808_s16  ;;  %562 = vrot.lane.b32.xlu1 %v2972_v36, %s2806_s29 }
 0x243   : > { %536 = vrot.lane.b32.xlu0 %v2968_v34, %s2809_s17  ;;  %526 = vrot.lane.b32.xlu1 %v2972_v36, %s2807_s15  ;;  %s404_s15 = sand.u32 1, %s2791_s22  }
 0x247   : > { %566 = vrot.lane.b32.xlu0 %v2968_v34, %s2810_s18  ;;  %532 = vrot.lane.b32.xlu1 %v2972_v36, %s2808_s16  ;;  %s2816_s16 = smov [#allocation2]  }
 0x24b   : > { %578 = vrot.lane.b32.xlu0 %v2968_v34, %s2811_s20  ;;  %538 = vrot.lane.b32.xlu1 %v2972_v36, %s2809_s17  ;;  %s2741_s17 = sshll.u32 %s2816_s16, 4  ;;  %s2742_s17 = int_to_ptr.vmem [resolvable:$false] %s2741_s17 }
 0x24f   : > { %584 = vrot.lane.b32.xlu0 %v2968_v34, %s2812_s26  ;;  %572 = vrot.lane.b32.xlu1 %v2968_v34, %s2813_s28 }
 0x253   : > { %568 = vrot.lane.b32.xlu1 %v2972_v36, %s2810_s18 }
 0x257   : > { %574 = vrot.lane.b32.xlu1 %v2972_v36, %s2813_s28 }
 0x25b   : > { %580 = vrot.lane.b32.xlu1 %v2972_v36, %s2811_s20 }
 0x2a1   : > { %v549_v38 = vpop.permute.xlu1 %548  ;;  %v543_v39 = vpop.permute.xlu0 %542 }
 0x2a5   : > { %v555_v43 = vpop.permute.xlu0 %554  ;;  %v545_v44 = vpop.permute.xlu1 %544 }
 0x2a6   : > { %v622_v53 = vcombine.low %v543_v39, %v555_v43  ;;  %v623_v57 = vcombine.high %v543_v39, %v555_v43 }
 0x2a8   : > { %v630_v60 = vrot.slane %v622_v53, %v2994_v52  ;;  %v637_v2 = vrot.slane %v623_v57, %v2994_v52 }
 0x2a9   : > { %v561_v47 = vpop.permute.xlu0 %560  ;;  %v551_v48 = vpop.permute.xlu1 %550 }
 0x2aa   : > { %v638_v51 = vcombine.low %v549_v38, %v561_v47  ;;  %v639_v54 = vcombine.high %v549_v38, %v561_v47 }
 0x2ac   : > { %v646_v59 = vrot.slane %v638_v51, %v2994_v52  ;;  %v653_v61 = vrot.slane %v639_v54, %v2994_v52 }
 0x2ad   : > { %v525_v55 = vpop.permute.xlu0 %524  ;;  %v557_v56 = vpop.permute.xlu1 %556 }
 0x2ae   : > { %v826_v62 = vcombine.low %v545_v44, %v557_v56  ;;  %v827_v63 = vcombine.high %v545_v44, %v557_v56  ;;  %v686_v4 = vcombine.low %v630_v60, %v646_v59  ;;  %v687_v5 = vcombine.high %v630_v60, %v646_v59 }
 0x2af   : > { %v702_v8 = vcombine.low %v637_v2, %v653_v61  ;;  %v703_v9 = vcombine.high %v637_v2, %v653_v61 }
 0x2b0   : > { %v834_v12 = vrot.slane %v826_v62, %v2994_v52  ;;  %v841_v13 = vrot.slane %v827_v63, %v2994_v52  ;;  %v694_v19 = vrot.slane %v686_v4, %v3000_v3  ;;  %v701_v20 = vrot.slane %v687_v5, %v3000_v3 }
 0x2b1   : > { %v531_v0 = vpop.permute.xlu0 %530  ;;  %v563_v1 = vpop.permute.xlu1 %562  ;;  %v710_v31 = vrot.slane %v702_v8, %v3000_v3  ;;  %v717_v32 = vrot.slane %v703_v9, %v3000_v3 }
 0x2b2   : > { %v842_v6 = vcombine.low %v551_v48, %v563_v1  ;;  %v843_v7 = vcombine.high %v551_v48, %v563_v1  ;;  %v590_v10 = vcombine.low %v2968_v34, %v531_v0  ;;  %v591_v11 = vcombine.high %v2968_v34, %v531_v0 }
 0x2b3   : > { %v2419_v43 = vcombine.low %v694_v19, %v701_v20  ;;  %v2421_v44 = vcombine.high %v694_v19, %v701_v20  ;;  %v2423_v49 = vcombine.low %v710_v31, %v717_v32  ;;  %v2425_v50 = vcombine.high %v710_v31, %v717_v32 }
 0x2b4   : > { %v850_v14 = vrot.slane %v842_v6, %v2994_v52  ;;  %v857_v16 = vrot.slane %v843_v7, %v2994_v52  ;;  %v598_v27 = vrot.slane %v590_v10, %v2994_v52  ;;  %v605_v28 = vrot.slane %v591_v11, %v2994_v52 }
 0x2b5   : > { %v537_v17 = vpop.permute.xlu0 %536  ;;  %v527_v18 = vpop.permute.xlu1 %526  ;;  %v3025_v57 = vrot.slane %v2419_v43, %v2994_v52  ;;  %v1029_v58 = vrot.slane %v2421_v44, %v2994_v52  ;;  %v1045_v1 = vrot.slane %v2423_v49, %v2994_v52  ;;  %v1061_v2 = vrot.slane %v2425_v50, %v2994_v52 }
 0x2b6   : > { %v606_v21 = vcombine.low %v525_v55, %v537_v17  ;;  %v607_v22 = vcombine.high %v525_v55, %v537_v17  ;;  %v890_v23 = vcombine.low %v834_v12, %v850_v14  ;;  %v891_v24 = vcombine.high %v834_v12, %v850_v14 }
 0x2b7   : > { %v906_v25 = vcombine.low %v841_v13, %v857_v16  ;;  %v907_v26 = vcombine.high %v841_v13, %v857_v16  ;;  %v1079_v50 = vcombine.high %v3025_v57, %v1029_v58 }
 0x2b8   : > { %v614_v29 = vrot.slane %v606_v21, %v2994_v52  ;;  %v621_v30 = vrot.slane %v607_v22, %v2994_v52  ;;  %v898_v39 = vrot.slane %v890_v23, %v3000_v3  ;;  %v905_v40 = vrot.slane %v891_v24, %v3000_v3 }
 0x2b9   : > { %v533_v33 = vpop.permute.xlu1 %532  ;;  %v914_v41 = vrot.slane %v906_v25, %v3000_v3  ;;  %v921_v42 = vrot.slane %v907_v26, %v3000_v3  ;;  %v1078_v23 = vcombine.low %v3025_v57, %v1029_v58  ;;  %v1110_v24 = vcombine.low %v1045_v1, %v1061_v2 }
 0x2ba   : > { %v654_v34 = vcombine.low %v598_v27, %v614_v29  ;;  %v655_v35 = vcombine.high %v598_v27, %v614_v29  ;;  %v670_v37 = vcombine.low %v605_v28, %v621_v30  ;;  %v671_v38 = vcombine.high %v605_v28, %v621_v30 }
 0x2bb   : > { %v2427_v51 = vcombine.low %v898_v39, %v905_v40  ;;  %v2429_v53 = vcombine.high %v898_v39, %v905_v40  ;;  %v2431_v54 = vcombine.low %v914_v41, %v921_v42  ;;  %v2433_v55 = vcombine.high %v914_v41, %v921_v42 }
 0x2bc   : > { %v662_v45 = vrot.slane %v654_v34, %v3000_v3  ;;  %v669_v46 = vrot.slane %v655_v35, %v3000_v3  ;;  %v678_v47 = vrot.slane %v670_v37, %v3000_v3  ;;  %v685_v48 = vrot.slane %v671_v38, %v3000_v3 }
 0x2bd   : > { %v539_v56 = vpop.permute.xlu1 %538  ;;  %v794_v59 = vcombine.low %v2972_v36, %v533_v33  ;;  %v795_v60 = vcombine.high %v2972_v36, %v533_v33  ;;  %v1149_v6 = vrot.slane %v2427_v51, %v2994_v52  ;;  %v1165_v7 = vrot.slane %v2429_v53, %v2994_v52 }
 0x2be   : > { %v2418_v61 = vcombine.low %v662_v45, %v669_v46  ;;  %v2420_v62 = vcombine.high %v662_v45, %v669_v46  ;;  %v2422_v63 = vcombine.low %v678_v47, %v685_v48  ;;  %v2424_v0 = vcombine.high %v678_v47, %v685_v48 }
 0x2bf   : > { %v810_v4 = vcombine.low %v527_v18, %v539_v56  ;;  %v811_v5 = vcombine.high %v527_v18, %v539_v56  ;;  %v1181_v8 = vrot.slane %v2431_v54, %v2994_v52  ;;  %v1197_v9 = vrot.slane %v2433_v55, %v2994_v52 }
 0x2c0   : > { %v802_v10 = vrot.slane %v794_v59, %v2994_v52  ;;  %v809_v11 = vrot.slane %v795_v60, %v2994_v52  ;;  %v3041_v14 = vrot.slane %v2418_v61, %v2994_v52  ;;  %v3044_v16 = vrot.slane %v2420_v62, %v2994_v52 }
 0x2c1   : > { %v818_v12 = vrot.slane %v810_v4, %v2994_v52  ;;  %v825_v13 = vrot.slane %v811_v5, %v2994_v52  ;;  %v3047_v17 = vrot.slane %v2422_v63, %v2994_v52  ;;  %v3050_v18 = vrot.slane %v2424_v0, %v2994_v52 }
 0x2c2   : > { %v1214_v25 = vcombine.low %v1149_v6, %v1165_v7  ;;  %v1062_v30 = vcombine.low %v3041_v14, %v3044_v16  ;;  %v1246_v32 = vcombine.low %v1181_v8, %v1197_v9  ;;  %v1086_v38 = vrot.slane %v1078_v23, %v3000_v3 }
 0x2c3   : > { %v858_v19 = vcombine.low %v802_v10, %v818_v12  ;;  %v859_v20 = vcombine.high %v802_v10, %v818_v12  ;;  %v874_v21 = vcombine.low %v809_v11, %v825_v13  ;;  %v875_v22 = vcombine.high %v809_v11, %v825_v13 }
 0x2c4   : > { %v1094_v31 = vcombine.low %v3047_v17, %v3050_v18  ;;  %v1118_v39 = vrot.slane %v1110_v24, %v3000_v3  ;;  %v1222_v40 = vrot.slane %v1214_v25, %v3000_v3  ;;  %v1070_v45 = vrot.slane %v1062_v30, %v3000_v3 }
 0x2c5   : > { %v866_v26 = vrot.slane %v858_v19, %v3000_v3  ;;  %v873_v27 = vrot.slane %v859_v20, %v3000_v3  ;;  %v882_v28 = vrot.slane %v874_v21, %v3000_v3  ;;  %v889_v29 = vrot.slane %v875_v22, %v3000_v3 }
 0x2c6   : > { %v1102_v46 = vrot.slane %v1094_v31, %v3000_v3  ;;  %v1254_v49 = vrot.slane %v1246_v32, %v3000_v3  ;;  %v1130_v51 = vcombine.low %v1086_v38, %v1118_v39  ;;  %v1111_v53 = vcombine.high %v1045_v1, %v1061_v2 }
 0x2c7   : > { %v2426_v33 = vcombine.low %v866_v26, %v873_v27  ;;  %v2428_v34 = vcombine.high %v866_v26, %v873_v27  ;;  %v2430_v35 = vcombine.low %v882_v28, %v889_v29  ;;  %v2432_v37 = vcombine.high %v882_v28, %v889_v29 }
 0x2c8   : > { %v1215_v54 = vcombine.high %v1149_v6, %v1165_v7  ;;  %v1247_v55 = vcombine.high %v1181_v8, %v1197_v9  ;;  %v1266_v60 = vcombine.low %v1222_v40, %v1254_v49  ;;  %v1093_v61 = vrot.slane %v1079_v50, %v3000_v3 }
 0x2c9   : > { %v1142_v41 = vrot.slane %v2426_v33, %v2994_v52  ;;  %v1158_v42 = vrot.slane %v2428_v34, %v2994_v52  ;;  %v1174_v43 = vrot.slane %v2430_v35, %v2994_v52  ;;  %v1190_v44 = vrot.slane %v2432_v37, %v2994_v52 }
 0x2ca   : > { %v1125_v62 = vrot.slane %v1111_v53, %v3000_v3  ;;  %v1229_v63 = vrot.slane %v1215_v54, %v3000_v3  ;;  %v1261_v0 = vrot.slane %v1247_v55, %v3000_v3  ;;  %v1410_v4 = vpack.c.bf16 %v1266_v60, %v1130_v51 }
 0x2cb   : > { %v1198_v47 = vcombine.low %v1142_v41, %v1158_v42  ;;  %v1230_v48 = vcombine.low %v1174_v43, %v1190_v44  ;;  %v1126_v57 = vcombine.low %v1070_v45, %v1102_v46  ;;  %v1267_v7 = vcombine.high %v1222_v40, %v1254_v49 }
 0x2cc   : > { %v1133_v1 = vcombine.high %v1093_v61, %v1125_v62  ;;  %v1269_v2 = vcombine.high %v1229_v63, %v1261_v0  ;;  %v1423_v5 = vsel %vm1418_vm2, %v1410_v4, 0  ;;  %v1063_v8 = vcombine.high %v3041_v14, %v3044_v16  ;;  %v573_v4 = vpop.permute.xlu1 %572 }
 0x2cd   : > { %v1206_v56 = vrot.slane %v1198_v47, %v3000_v3  ;;  %v1238_v59 = vrot.slane %v1230_v48, %v3000_v3  ;;  %2524 = vmatpush3.bf16.xpose.msra.mxu1 %v1423_v5  ;;  %v1095_v10 = vcombine.high %v3047_v17, %v3050_v18  ;;  %v1199_v11 = vcombine.high %v1142_v41, %v1158_v42 }
 0x2ce   : > { %v1413_v9 = vpack.c.bf16 %v1269_v2, %v1133_v1  ;;  %v1231_v12 = vcombine.high %v1174_v43, %v1190_v44  ;;  %2529 = vmatprep.subr.bf16.mxu1 %v2801_v15  ;;  %v1131_v13 = vcombine.high %v1086_v38, %v1118_v39  ;;  %v1077_v19 = vrot.slane %v1063_v8, %v3000_v3 }
 0x2cf   : > { %v1262_v58 = vcombine.low %v1206_v56, %v1238_v59  ;;  %v1127_v20 = vcombine.high %v1070_v45, %v1102_v46  ;;  %v1263_v21 = vcombine.high %v1206_v56, %v1238_v59  ;;  %v1109_v23 = vrot.slane %v1095_v10, %v3000_v3 }
 0x2d0   : > { %v1564_v22 = vsel %vm1418_vm2, %v1413_v9, 0  ;;  %v1213_v14 = vrot.slane %v1199_v11, %v3000_v3  ;;  %v1245_v16 = vrot.slane %v1231_v12, %v3000_v3  ;;  %v1411_v24 = vpack.c.bf16 %v1267_v7, %v1131_v13 }
 0x2d1   : > { %v1406_v6 = vpack.c.bf16 %v1262_v58, %v1126_v57  ;;  %2542 = vmatpush3.bf16.xpose.msra.mxu0 %v1564_v22  ;;  %v1407_v17 = vpack.c.bf16 %v1263_v21, %v1127_v20  ;;  %v1128_v18 = vcombine.low %v1077_v19, %v1109_v23  ;;  %v1129_v25 = vcombine.high %v1077_v19, %v1109_v23  ;;  %v569_v58 = vpop.permute.xlu1 %568 }
 0x2d2   : > { %v1264_v26 = vcombine.low %v1213_v14, %v1245_v16  ;;  %v1265_v27 = vcombine.high %v1213_v14, %v1245_v16  ;;  %2553 = vmatprep.subr.bf16.mxu0 %v2801_v15  ;;  %v1470_v30 = vsel %vm1418_vm2, %v1411_v24, 0  ;;  %v1268_v31 = vcombine.low %v1229_v63, %v1261_v0  ;;  %v567_v63 = vpop.permute.xlu0 %566 }
 0x2d3   : > { %v1132_v32 = vcombine.low %v1093_v61, %v1125_v62 }
 0x2d4   : > { %v1409_v28 = vpack.c.bf16 %v1265_v27, %v1129_v25  ;;  %v1408_v29 = vpack.c.bf16 %v1264_v26, %v1128_v18  ;;  %2526 = vmatmul.mubr.msk.bf16.vlgmr.msra.gmra.mrb[4].mxu1 %vm1418_vm2, %v1406_v6 }
 0x2d5   : > { %2530 = vmatpush3.bf16.xpose.msra.mxu1 %v1470_v30  ;;  %2531 = vmatprep.mubr.msk.bf16.mxu1 %vm2802_vm1, %v2801_v15  ;;  %v1412_v33 = vpack.c.bf16 %v1268_v31, %v1132_v32  ;;  %v575_v7 = vpop.permute.xlu1 %574 }
 0x2d6   : > { %2535 = vmatprep.subr.bf16.mxu1 %v2801_v15  ;;  %v579_v0 = vpop.permute.xlu0 %578 }
 0x2d7   : > { %v1517_v34 = vsel %vm1418_vm2, %v1412_v33, 0  ;;  %v726_v2 = vcombine.low %v567_v63, %v579_v0  ;;  %v727_v5 = vcombine.high %v567_v63, %v579_v0 }
 0x2d8   : > { %2544 = vmatmul.mubr.msk.bf16.vlgmr.msra.gmra.mrb[0].mxu0 %vm1418_vm2, %v1409_v28 }
 0x2d9   : > { %2555 = vmatprep.mubr.msk.bf16.mxu0 %vm2802_vm1, %v2801_v15  ;;  %v734_v8 = vrot.slane %v726_v2, %v2994_v52  ;;  %v741_v10 = vrot.slane %v727_v5, %v2994_v52  ;;  %v581_v20 = vpop.permute.xlu1 %580 }
 0x2da   : > { %v585_v57 = vpop.permute.xlu0 %584  ;;  %v930_v28 = vcombine.low %v569_v58, %v581_v20 }
 0x2db   : > { %v742_v1 = vcombine.low %v573_v4, %v585_v57 }
 0x2dc   : > { %2532 = vmatmul.mubr.msk.bf16.vlgmr.msra.gmra.mrb[8].mxu1 %vm1418_vm2, %v1407_v17 }
 0x2dd   : > { %2536 = vmatpush3.bf16.xpose.msra.mxu1 %v1517_v34  ;;  %2537 = vmatprep.mubr.msk.bf16.mxu1 %vm2802_vm1, %v2801_v15  ;;  %v750_v6 = vrot.slane %v742_v1, %v2994_v52 }
 0x2de   : > { %2547 = vmatprep.subr.bf16.mxu1 %v2801_v15 }
 0x2df   : > { %v758_v11 = vcombine.low %v734_v8, %v750_v6  ;;  %v759_v12 = vcombine.high %v734_v8, %v750_v6 }
 0x2e1   : > { %v766_v21 = vrot.slane %v758_v11, %v3000_v3  ;;  %v773_v22 = vrot.slane %v759_v12, %v3000_v3 }
 0x2e3   : > { %v1270_v26 = vcombine.low %v766_v21, %v773_v22  ;;  %v2434_v27 = vcombine.high %v766_v21, %v773_v22 }
 0x2e4   : > { %2538 = vmatmul.mubr.msk.bf16.vlgmr.msra.gmra.mrb[12].mxu1 %vm1418_vm2, %v1408_v29  ;;  %v931_v29 = vcombine.high %v569_v58, %v581_v20 }
 0x2e5   : > { %2549 = vmatprep.mubr.msk.bf16.mxu1 %vm2802_vm1, %v2801_v15 }
 0x3a7   : > { %v1459_v35 = vpop.f32.mrb[4].mxu1 }
 0x3a8   : > { %v2527_v37 = vpop.f32.mrb[5].mxu1  ;;  %v1608_v38 = vsel %vm1607_vm3, %v1459_v35, -inf }
 0x3a9   : > { %1609 = vmax.xlane.f32.xlu0 %v1608_v38  ;;  %v1462_v39 = vpop.f32.mrb[6].mxu1  ;;  %v1285_v38 = vrot.slane %v2434_v27, %v2994_v52 }
 0x3aa   : > { %v2528_v41 = vpop.f32.mrb[7].mxu1  ;;  %v1611_v42 = vsel %vm1607_vm3, %v1462_v39, -inf }
 0x3ab   : > { %v3107_v40 = vpop.f32.mrb[0].mxu0  ;;  %1612 = vmax.xlane.f32.xlu1 %v1611_v42  ;;  %v938_v41 = vrot.slane %v930_v28, %v2994_v52  ;;  %v945_v42 = vrot.slane %v931_v29, %v2994_v52 }
 0x3ac   : > { %v2545_v43 = vpop.f32.mrb[1].mxu0  ;;  %v1626_v60 = vsel %vm1607_vm3, %v3107_v40, -inf }
 0x3ad   : > { %v3110_v44 = vpop.f32.mrb[2].mxu0 }
 0x3ae   : > { %v2546_v45 = vpop.f32.mrb[3].mxu0  ;;  %v1629_v61 = vsel %vm1607_vm3, %v3110_v44, -inf }
 0x3af   : > { %v3112_v46 = vpop.f32.mrb[8].mxu1 }
 0x3b0   : > { %v2533_v47 = vpop.f32.mrb[9].mxu1  ;;  %v1614_v48 = vsel %vm1607_vm3, %v3112_v46, -inf }
 0x3b1   : > { %1615 = vmax.xlane.f32.xlu0 %v1614_v48  ;;  %v3116_v49 = vpop.f32.mrb[10].mxu1 }
 0x3b2   : > { %v2534_v50 = vpop.f32.mrb[11].mxu1  ;;  %v1617_v51 = vsel %vm1607_vm3, %v3116_v49, -inf }
 0x3b5   : > { %1618 = vmax.xlane.f32.xlu0 %v1617_v51 }
 0x3b7   : > { %v3120_v53 = vpop.f32.mrb[12].mxu1 }
 0x3b8   : > { %v2539_v54 = vpop.f32.mrb[13].mxu1  ;;  %v1620_v55 = vsel %vm1607_vm3, %v3120_v53, -inf }
 0x3b9   : > { %1621 = vmax.xlane.f32.xlu0 %v1620_v55  ;;  %v3124_v56 = vpop.f32.mrb[14].mxu1 }
 0x3ba   : > { %v2540_v59 = vpop.f32.mrb[15].mxu1  ;;  %v1623_v62 = vsel %vm1607_vm3, %v3124_v56, -inf }
 0x3bc   : > { %586 = vrot.lane.b32.xlu1 %v2972_v36, %s2812_s26  ;;  %v743_v36 = vcombine.high %v573_v4, %v585_v57  ;;  %s2475_s26 = sshll.u32 %s2905_s25, 8  ;;  %s3313_s25 = scalar_lea.sflag [#allocation3], %s404_s15 }
 0x3bd   : > { %1627 = vmax.xlane.f32.xlu0 %v1626_v60  ;;  %s3306_s0 = scalar_lea.hbm %s3366_s12, %s2475_s26  ;;  %s2743_s26 = scalar_lea.vmem %s2742_s17, 512 }
 0x3be   : > { %v757_v9 = vrot.slane %v743_v36, %v2994_v52 }
 0x3c0   : > { %v774_v13 = vcombine.low %v741_v10, %v757_v9  ;;  %v775_v19 = vcombine.high %v741_v10, %v757_v9 }
 0x3c1   : > { %1630 = vmax.xlane.f32.xlu0 %v1629_v61 }
 0x3c2   : > { %v782_v16 = vrot.slane %v774_v13, %v3000_v3  ;;  %v789_v24 = vrot.slane %v775_v19, %v3000_v3 }
 0x3c4   : > { %v1286_v31 = vcombine.low %v782_v16, %v789_v24  ;;  %v2435_v32 = vcombine.high %v782_v16, %v789_v24 }
 0x3c6   : > { %v1293_v48 = vrot.slane %v1286_v31, %v2994_v52  ;;  %v1301_v50 = vrot.slane %v2435_v32, %v2994_v52 }
 0x3c8   : > { %v1318_v58 = vcombine.low %v1293_v48, %v1301_v50 }
 0x3ca   : > { %v1326_v20 = vrot.slane %v1318_v58, %v3000_v3 }
 0x3e0   : > { %1624 = vmax.xlane.f32.xlu1 %v1623_v62 }
 0x436   : > { %v1610_v23 = vpop.xlane.xlu0 %1609 }
 0x437   : > { %v1632_v14 = vsub.f32 %v1459_v35, %v1610_v23  ;;  %v3143_v35 = vrot.slane %v1270_v26, %v2994_v52 }
 0x438   : > { %v1613_v17 = vpop.xlane.xlu1 %1612 }
 0x439   : > { %v1640_v18 = vmul.f32 1.442695, %v1632_v14  ;;  %v1633_v25 = vsub.f32 %v1462_v39, %v1613_v17  ;;  %v1302_v62 = vcombine.low %v3143_v35, %v1285_v38 }
 0x43b   : > { %v1642_v30 = vmul.f32 1.442695, %v1633_v25  ;;  %2695 = vpow2.f32 %v1640_v18  ;;  %v1310_v9 = vrot.slane %v1302_v62, %v3000_v3  ;;  %v1303_v18 = vcombine.high %v3143_v35, %v1285_v38 }
 0x43c   : > { %v587_v33 = vpop.permute.xlu1 %586  ;;  %v1319_v25 = vcombine.high %v1293_v48, %v1301_v50 }
 0x43d   : > { %2697 = vpow2.f32 %v1642_v30  ;;  %v946_v34 = vcombine.low %v575_v7, %v587_v33  ;;  %v947_v37 = vcombine.high %v575_v7, %v587_v33  ;;  %v1334_v30 = vcombine.low %v1310_v9, %v1326_v20 }
 0x43e   : > { %v1616_v39 = vpop.xlane.xlu0 %1615  ;;  %v1317_v35 = vrot.slane %v1303_v18, %v3000_v3 }
 0x43f   : > { %v954_v43 = vrot.slane %v946_v34, %v2994_v52  ;;  %v961_v45 = vrot.slane %v947_v37, %v2994_v52  ;;  %v1634_v47 = vsub.f32 %v3112_v46, %v1616_v39  ;;  %v1335_v37 = vcombine.high %v1310_v9, %v1326_v20 }
 0x441   : > { %v962_v51 = vcombine.low %v938_v41, %v954_v43  ;;  %v963_v54 = vcombine.high %v938_v41, %v954_v43  ;;  %v978_v55 = vcombine.low %v945_v42, %v961_v45  ;;  %v979_v59 = vcombine.high %v945_v42, %v961_v45 }
 0x442   : > { %v1644_v60 = vmul.f32 1.442695, %v1634_v47  ;;  %v1619_v61 = vpop.xlane.xlu0 %1618 }
 0x443   : > { %v970_v63 = vrot.slane %v962_v51, %v3000_v3  ;;  %v977_v0 = vrot.slane %v963_v54, %v3000_v3  ;;  %v986_v4 = vrot.slane %v978_v55, %v3000_v3  ;;  %v993_v46 = vrot.slane %v979_v59, %v3000_v3 }
 0x444   : > { %2699 = vpow2.f32 %v1644_v60  ;;  %v1635_v57 = vsub.f32 %v3116_v49, %v1619_v61 }
 0x445   : > { %v1338_v1 = vcombine.low %v970_v63, %v977_v0  ;;  %v2436_v2 = vcombine.high %v970_v63, %v977_v0  ;;  %v1354_v36 = vcombine.low %v986_v4, %v993_v46  ;;  %v2437_v5 = vcombine.high %v986_v4, %v993_v46  ;;  %v2696_v6 = vpop.eup %2695 }
 0x446   : > { %v1646_v7 = vmul.f32 1.442695, %v1635_v57  ;;  %v1622_v8 = vpop.xlane.xlu0 %1621 }
 0x447   : > { %v2698_v10 = vpop.eup %2697  ;;  %v1345_v11 = vrot.slane %v1338_v1, %v2994_v52  ;;  %v1353_v12 = vrot.slane %v2436_v2, %v2994_v52  ;;  %v1361_v13 = vrot.slane %v1354_v36, %v2994_v52  ;;  %v1369_v19 = vrot.slane %v2437_v5, %v2994_v52 }
 0x448   : > { %2701 = vpow2.f32 %v1646_v7  ;;  %v1636_v49 = vsub.f32 %v3120_v53, %v1622_v8  ;;  %v1680_v21 = vpack.c.bf16 %v2698_v10, %v2696_v6  ;;  %v1659_v62 = vsel %vm1607_vm3, %v2698_v10, 0.0  ;;  %v2446_v7 = vld [vmem:[%s3358_s4 + $0x4] sm:$0xf] }
 0x449   : > { %v1370_v22 = vcombine.low %v1345_v11, %v1353_v12  ;;  %v1386_v23 = vcombine.low %v1361_v13, %v1369_v19  ;;  %v1371_v14 = vcombine.high %v1345_v11, %v1353_v12  ;;  %v1387_v16 = vcombine.high %v1361_v13, %v1369_v19 }
 0x44a   : > { %v1648_v24 = vmul.f32 1.442695, %v1636_v49  ;;  %v1628_v17 = vpop.xlane.xlu0 %1627  ;;  %v1888_v8 = vsel %vm1886_vm4, %v2446_v7, 0 }
 0x44b   : > { %v1638_v26 = vsub.f32 %v3107_v40, %v1628_v17  ;;  %v1378_v27 = vrot.slane %v1370_v22, %v3000_v3  ;;  %v1394_v52 = vrot.slane %v1386_v23, %v3000_v3  ;;  %v1385_v53 = vrot.slane %v1371_v14, %v3000_v3 }
 0x44c   : > { %2703 = vpow2.f32 %v1648_v24  ;;  %v1401_v28 = vrot.slane %v1387_v16, %v3000_v3  ;;  %v1333_v40 = vrot.slane %v1319_v25, %v3000_v3  ;;  %v1656_v3 = vsel %vm1607_vm3, %v2696_v6, 0.0 }
 0x44d   : > { %v1652_v29 = vmul.f32 1.442695, %v1638_v26  ;;  %v1402_v31 = vcombine.low %v1378_v27, %v1394_v52  ;;  %v1403_v32 = vcombine.high %v1378_v27, %v1394_v52  ;;  %v2451_v52 = vld [vmem:[%s3358_s4 + $0xc] sm:$0xf] }
 0x44e   : > { %v2700_v33 = vpop.eup %2699  ;;  %v1631_v34 = vpop.xlane.xlu0 %1630  ;;  %v1404_v43 = vcombine.low %v1385_v53, %v1401_v28  ;;  %v1405_v45 = vcombine.high %v1385_v53, %v1401_v28  ;;  %v1336_v50 = vcombine.low %v1317_v35, %v1333_v40  ;;  %v1337_v51 = vcombine.high %v1317_v35, %v1333_v40 }
 0x44f   : > { %2705 = vpow2.f32 %v1652_v29  ;;  %v1639_v38 = vsub.f32 %v3110_v44, %v1631_v34  ;;  %v1662_v41 = vsel %vm1607_vm3, %v2700_v33, 0.0  ;;  %v1414_v39 = vpack.c.bf16 %v1402_v31, %v1334_v30 }
 0x450   : > { %1663 = vadd.xlane.f32.xlu0 %v1662_v41  ;;  %v1415_v42 = vpack.c.bf16 %v1403_v32, %v1335_v37  ;;  %v1416_v55 = vpack.c.bf16 %v1404_v43, %v1336_v50  ;;  %v1417_v59 = vpack.c.bf16 %v1405_v45, %v1337_v51  ;;  %v2035_v35 = vsel %vm1886_vm4, %v2451_v52, 0 }
 0x451   : > { %v1654_v47 = vmul.f32 1.442695, %v1639_v38  ;;  %2548 = vmatpush3.bf16.msra.mxu1 %v1414_v39 }
 0x452   : > { %v2702_v48 = vpop.eup %2701  ;;  %2554 = vmatpush3.bf16.msra.mxu0 %v1415_v42  ;;  %2559 = vmatprep.subr.bf16.mxu1 %v2801_v15 }
 0x453   : > { %2707 = vpow2.f32 %v1654_v47  ;;  %v1665_v44 = vsel %vm1607_vm3, %v2702_v48, 0.0  ;;  %v1681_v54 = vpack.c.bf16 %v2702_v48, %v2700_v33  ;;  %2565 = vmatprep.subr.bf16.mxu0 %v2801_v15  ;;  %v2449_v33 = vld [vmem:[%s3358_s4 + $0x8] sm:$0xf] }
 0x454   : > { %1657 = vadd.xlane.f32.xlu0 %v1656_v3  ;;  %1666 = vadd.xlane.f32.xlu1 %v1665_v44  ;;  %v1984_v40 = vsel %vm1886_vm4, %v2449_v33, 0 }
 0x455   : > { %2550 = vmatmul.mubr.msk.bf16.vlgmr.msra.gmra.mrb[16].mxu1 %vm1607_vm3, %v1680_v21  ;;  %2556 = vmatmul.mubr.msk.bf16.vlgmr.msra.gmra.mrb[4].mxu0 %vm1607_vm3, %v1681_v54 }
 0x456   : > { %v2704_v60 = vpop.eup %2703  ;;  %2560 = vmatpush3.bf16.msra.mxu1 %v1416_v55  ;;  %2566 = vmatpush3.bf16.msra.mxu0 %v1417_v59 }
 0x457   : > { %v1668_v61 = vsel %vm1607_vm3, %v2704_v60, 0.0  ;;  %2567 = vmatprep.mubr.msk.bf16.mxu0 %vm2802_vm1, %v2801_v15  ;;  %2561 = vmatprep.mubr.msk.bf16.mxu1 %vm2802_vm1, %v2801_v15 }
 0x458   : > { %1669 = vadd.xlane.f32.xlu0 %v1668_v61  ;;  %1660 = vadd.xlane.f32.xlu1 %v1659_v62 }
 0x459   : > { %v2706_v63 = vpop.eup %2705  ;;  %2571 = vmatprep.subr.bf16.mxu1 %v2801_v15  ;;  %2577 = vmatprep.subr.bf16.mxu0 %v2801_v15 }
 0x45a   : > { %v1674_v0 = vsel %vm1607_vm3, %v2706_v63, 0.0 }
 0x45c   : > { %1675 = vadd.xlane.f32.xlu0 %v1674_v0 }
 0x45d   : > { %v2708_v4 = vpop.eup %2707 }
 0x45e   : > { %v1683_v46 = vpack.c.bf16 %v2708_v4, %v2706_v63  ;;  %v1677_v6 = vsel %vm1607_vm3, %v2708_v4, 0.0 }
 0x460   : > { %2568 = vmatmul.mubr.msk.bf16.vlgmr.msra.gmra.mrb[8].mxu0 %vm1607_vm3, %v1683_v46 }
 0x461   : > { %2579 = vmatprep.mubr.msk.bf16.mxu0 %vm2802_vm1, %v2801_v15 }
 0x46d   : > { %v1625_v57 = vpop.xlane.xlu1 %1624 }
 0x46e   : > { %v1637_v58 = vsub.f32 %v3124_v56, %v1625_v57  ;;  %v1880_v56 = vld [vmem:[%s3358_s4] sm:$0xf] }
 0x46f   : > { %v1935_v9 = vsel %vm1886_vm4, %v1880_v56, 0 }
 0x470   : > { %v1650_v1 = vmul.f32 1.442695, %v1637_v58  ;;  %2578 = vmatpush3.bf16.msra.mxu0 %v1935_v9 }
 0x471   : > { %2589 = vmatprep.subr.bf16.mxu0 %v2801_v15 }
 0x472   : > { %2709 = vpow2.f32 %v1650_v1 }
 0x47c   : > { %v2710_v2 = vpop.eup %2709 }
 0x47d   : > { %v1671_v36 = vsel %vm1607_vm3, %v2710_v2, 0.0  ;;  %v1682_v5 = vpack.c.bf16 %v2710_v2, %v2704_v60 }
 0x47e   : > { %1672 = vadd.xlane.f32.xlu1 %v1671_v36 }
 0x47f   : > { %2562 = vmatmul.mubr.msk.bf16.vlgmr.msra.gmra.mrb[20].mxu1 %vm1607_vm3, %v1682_v5 }
 0x480   : > { %2573 = vmatprep.mubr.msk.bf16.mxu1 %vm2802_vm1, %v2801_v15  ;;  %2572 = vmatpush3.bf16.msra.mxu1 %v1888_v8 }
 0x481   : > { %2583 = vmatprep.subr.bf16.mxu1 %v2801_v15 }
 0x482   : > { %1678 = vadd.xlane.f32.xlu1 %v1677_v6 }
 0x4dd   : > { %v1664_v10 = vpop.xlane.xlu0 %1663 }
 0x4de   : > { %2711 = vrcp.f32 %v1664_v10 }
 0x4e1   : > { %v1667_v11 = vpop.xlane.xlu1 %1666  ;;  %v1658_v12 = vpop.xlane.xlu0 %1657 }
 0x4e2   : > { %2713 = vrcp.f32 %v1658_v12  ;;  %v2453_v12 = vld [vmem:[%s3359_s5] ss:$0 sm:$0xff] }
 0x4e3   : > { %2715 = vrcp.f32 %v1667_v11 }
 0x4e5   : > { %v1661_v13 = vpop.xlane.xlu1 %1660  ;;  %v1670_v19 = vpop.xlane.xlu0 %1669 }
 0x4e6   : > { %2717 = vrcp.f32 %v1661_v13 }
 0x4e8   : > { %v2712_v21 = vpop.eup %2711 }
 0x4e9   : > { %v1676_v20 = vpop.xlane.xlu0 %1675 }
 0x4ea   : > { %2719 = vrcp.f32 %v1676_v20 }
 0x4ec   : > { %v2714_v23 = vpop.eup %2713 }
 0x4ed   : > { %v2716_v24 = vpop.eup %2715 }
 0x4f0   : > { %v2718_v25 = vpop.eup %2717 }
 0x4f4   : > { %v2720_v38 = vpop.eup %2719 }
 0x50b   : > { %v1673_v49 = vpop.xlane.xlu1 %1672 }
 0x50f   : > { %v1679_v22 = vpop.xlane.xlu1 %1678 }
 0x510   : > { %2721 = vrcp.f32 %v1679_v22 }
 0x511   : > { %2723 = vrcp.f32 %v1670_v19 }
 0x512   : > { %2725 = vrcp.f32 %v1673_v49 }
 0x51a   : > { %v2722_v39 = vpop.eup %2721 }
 0x51b   : > { %v2724_v3 = vpop.eup %2723 }
 0x51c   : > { %v2726_v54 = vpop.eup %2725 }
 0x528   : > { %v1721_v14 = vpop.f32.mrb[16].mxu1  ;;  %v1765_v16 = vpop.f32.mrb[4].mxu0 }
 0x529   : > { %v2551_v17 = vpop.f32.mrb[17].mxu1  ;;  %v2557_v18 = vpop.f32.mrb[5].mxu0  ;;  %v1868_v53 = vmul.f32 %v2714_v23, %v1721_v14  ;;  %v1870_v28 = vmul.f32 %v2712_v21, %v1765_v16  ;;  %v2735_v14 = vld [vmem:[%s2937_s19] sm:$0xff] }
 0x52a   : > { %v1724_v26 = vpop.f32.mrb[18].mxu1  ;;  %v1768_v27 = vpop.f32.mrb[6].mxu0  ;;  %v2736_v17 = vld [vmem:[%s2937_s19 + $0x8] sm:$0xff]  ;;  %s2410_s19 = sshll.u32 %s404_s15, 4 }
 0x52b   : > { %v1869_v29 = vmul.f32 %v2718_v25, %v1724_v26  ;;  %v1871_v30 = vmul.f32 %v2716_v24, %v1768_v27  ;;  %v2552_v31 = vpop.f32.mrb[19].mxu1  ;;  %v2558_v32 = vpop.f32.mrb[7].mxu0  ;;  %s406_s18 = scalar_lea.vmem [#allocation2], %s2410_s19 }
 0x52c   : > { %s2344_s20 = sshll.u32 %s406_s18, 4  ;;  %s3308_s20 = int_to_ptr.vmem [resolvable:$true] %s2344_s20 }
 0x52d   : > { %v1876_v34 = vpack.c.bf16 %v1869_v29, %v1868_v53  ;;  %v1877_v37 = vpack.c.bf16 %v1871_v30, %v1870_v28  ;;  %s2737_s19 = scalar_lea.vmem %s3308_s20, 256  ;;  %p2744_p0 = scmp.lt.s32.totalorder %s3308_s20, %s2742_s17 }
 0x52e   : > { %p2738_p11 = scmp.ne.s32.totalorder %s3308_s20, %s2737_s19  ;;  %p2745_p1 = scmp.lt.s32.totalorder %s2743_s26, %s2737_s19 }
 0x52f   : > { %2574 = vmatmul.mubr.msk.bf16.vlgmr.msra.gmra.mrb[24].mxu1 %vm1418_vm2, %v1877_v37  ;;  %2580 = vmatmul.mubr.msk.bf16.vlgmr.msra.gmra.mrb[12].mxu0 %vm1418_vm2, %v1876_v34  ;;  %v2681_v34 = vld [vmem:[%s3362_s8] sm:$0xff]   ;;  %v2682_v37 = vld [vmem:[%s3362_s8 + $0x8] sm:$0xff]  }
 0x530   : > { %2590 = vmatpush3.bf16.msra.mxu0 %v2035_v35  ;;  %2591 = vmatprep.mubr.msk.bf16.mxu0 %vm2802_vm1, %v2801_v15  ;;  %v2683_v35 = vld [vmem:[%s3364_s10] sm:$0xff]   ;;  %p2739_p12 = pnand %p2738_p11, %p2922_p5  ;;  %p2746_p2 = por %p2745_p1, %p2744_p0 }
 0x531   : > { %2584 = vmatpush3.bf16.msra.mxu1 %v1984_v40  ;;  %2585 = vmatprep.mubr.msk.bf16.mxu1 %vm2802_vm1, %v2801_v15  ;;  %v2684_v40 = vld [vmem:[%s3364_s10 + $0x8] sm:$0xff]  }
 0x532   : > { %2595 = vmatprep.subr.bf16.mxu1 %v2801_v15  ;;  %2603 = vmatprep.subr.bf16.mxu0 %v2801_v15  ;;  %p2740_p13 = pneg %p2739_p12 }
 0x533   : > { %v1853_v41 = vpop.f32.mrb[8].mxu0 }
 0x534   : > { %v2569_v42 = vpop.f32.mrb[9].mxu0  ;;  %v1874_v45 = vmul.f32 %v2720_v38, %v1853_v41  ;;  %p2747_p3 = pnand %p2746_p2, %p2740_p13 }
 0x535   : > { %v1856_v43 = vpop.f32.mrb[10].mxu0 }
 0x536   : > { %v1875_v47 = vmul.f32 %v2722_v39, %v1856_v43  ;;  %v2570_v48 = vpop.f32.mrb[11].mxu0 }
 0x537   : > { %v2454_v48 = vld [vmem:[%s3360_s6] ss:$0 sm:$0xff] }
 0x538   : > { %v1879_v50 = vpack.c.bf16 %v1875_v47, %v1874_v45 }
 0x53a   : > { %2592 = vmatmul.mubr.msk.bf16.vlgmr.msra.gmra.mrb[16].mxu0 %vm1418_vm2, %v1879_v50 }
 0x53b   : > { %2619 = vmatprep.mubr.msk.bf16.mxu0 %vm2802_vm1, %v2801_v15  ;;  %2604 = vmatpush3.bf16.msra.mxu0 %v2683_v35 }
 0x53c   : > { %2605 = vmatprep.subr.bf16.mxu0 %v2801_v15 }
 0x53f   : > { %2606 = vmatpush3.bf16.msra.mxu0 %v2684_v40 }
 0x540   : > { %2607 = vmatprep.subr.bf16.mxu0 %v2801_v15 }
 0x552   : > { %v1809_v51 = vpop.f32.mrb[20].mxu1 }
 0x553   : > { %v2563_v44 = vpop.f32.mrb[21].mxu1  ;;  %v1872_v59 = vmul.f32 %v2724_v3, %v1809_v51 }
 0x554   : > { %v1812_v55 = vpop.f32.mrb[22].mxu1 }
 0x555   : > { %v1873_v60 = vmul.f32 %v2726_v54, %v1812_v55  ;;  %v2564_v61 = vpop.f32.mrb[23].mxu1  ;;  %v2455_v54 = vld [vmem:[%s3361_s7] ss:$0 sm:$0xff] }
 0x557   : > { %v1878_v62 = vpack.c.bf16 %v1873_v60, %v1872_v59 }
 0x559   : > { %2586 = vmatmul.mubr.msk.bf16.vlgmr.msra.gmra.mrb[28].mxu1 %vm1418_vm2, %v1878_v62  ;;  %v2685_v62 = vld [vmem:[%s3364_s10 + $0x10] sm:$0xff]  }
 0x55a   : > { %2599 = vmatprep.mubr.msk.bf16.mxu1 %vm2802_vm1, %v2801_v15  ;;  %2596 = vmatpush3.bf16.msra.mxu1 %v2681_v34 }
 0x55b   : > { %2597 = vmatprep.subr.bf16.mxu1 %v2801_v15  ;;  %2608 = vmatpush3.bf16.msra.mxu0 %v2685_v62 }
 0x55c   : > { %2609 = vmatprep.subr.bf16.mxu0 %v2801_v15 }
 0x55e   : > { %2598 = vmatpush3.bf16.msra.mxu1 %v2682_v37 }
 0x602   : > { %v1924_v63 = vpop.f32.mrb[24].mxu1  ;;  %v1971_v0 = vpop.f32.mrb[12].mxu0 }
 0x603   : > { %v1972_v4 = vadd.f32 %v1971_v0, %v1924_v63  ;;  %v2575_v46 = vpop.f32.mrb[25].mxu1  ;;  %v2581_v57 = vpop.f32.mrb[13].mxu0  ;;  %v2686_v63 = vld [vmem:[%s3364_s10 + $0x18] sm:$0xff]   ;;  %v2687_v0 = vld [vmem:[%s3364_s10 + $0x20] sm:$0xff]  }
 0x604   : > { %v1927_v58 = vpop.f32.mrb[26].mxu1  ;;  %v1974_v1 = vpop.f32.mrb[14].mxu0  ;;  %2610 = vmatpush3.bf16.msra.mxu0 %v2686_v63  ;;  %v2689_v46 = vld [vmem:[%s3364_s10 + $0x30] sm:$0xff]   ;;  %v2690_v57 = vld [vmem:[%s3364_s10 + $0x38] sm:$0xff]  }
 0x605   : > { %v1975_v2 = vadd.f32 %v1974_v1, %v1927_v58  ;;  %v2576_v36 = vpop.f32.mrb[27].mxu1  ;;  %v2582_v5 = vpop.f32.mrb[15].mxu0  ;;  %2611 = vmatprep.subr.bf16.mxu0 %v2801_v15  ;;  %v2456_v58 = vld [vmem:[%s3363_s9] ss:$0 sm:$0xff] }
 0x608   : > { %2612 = vmatpush3.bf16.msra.mxu0 %v2687_v0 }
 0x609   : > { %2613 = vmatprep.subr.bf16.mxu0 %v2801_v15 }
 0x60d   : > { %v2071_v6 = vpop.f32.mrb[16].mxu0 }
 0x60e   : > { %v2593_v7 = vpop.f32.mrb[17].mxu0 }
 0x60f   : > { %v2074_v56 = vpop.f32.mrb[18].mxu0 }
 0x610   : > { %v2594_v8 = vpop.f32.mrb[19].mxu0 }
 0x62c   : > { %v2020_v9 = vpop.f32.mrb[28].mxu1 }
 0x62d   : > { %v2027_v10 = vadd.f32 %v2020_v9, %v1972_v4  ;;  %v2587_v11 = vpop.f32.mrb[29].mxu1  ;;  %v2688_v4 = vld [vmem:[%s3364_s10 + $0x28] sm:$0xff]  }
 0x62e   : > { %v2023_v13 = vpop.f32.mrb[30].mxu1  ;;  %2614 = vmatpush3.bf16.msra.mxu0 %v2688_v4 }
 0x62f   : > { %v2078_v19 = vadd.f32 %v2071_v6, %v2027_v10  ;;  %v2028_v49 = vadd.f32 %v2023_v13, %v1975_v2  ;;  %v2588_v20 = vpop.f32.mrb[31].mxu1  ;;  %2615 = vmatprep.subr.bf16.mxu0 %v2801_v15 }
 0x631   : > { %v2087_v21 = vadd.f32 %v2453_v12, %v2078_v19  ;;  %v2079_v22 = vadd.f32 %v2074_v56, %v2028_v49 }
 0x632   : > { %2616 = vmatpush3.bf16.msra.mxu0 %v2689_v46 }
 0x633   : > { %v2088_v23 = vadd.f32 %v2453_v12, %v2079_v22  ;;  %v3236_v16 = vadd.f32 %v2735_v14, %v2087_v21  ;;  %2617 = vmatprep.subr.bf16.mxu0 %v2801_v15  ;;  %v2460_v21 = vld [vmem:[%s3365_s11] ss:$0 sm:$0xff] }
 0x635   : > { %v2093_v24 = vsel %vm417_vm0, %v3236_v16, 0.0  ;;  %v3241_v18 = vadd.f32 %v2736_v17, %v2088_v23 }
 0x636   : > { %2094 = vadd.xlane.f32.xlu0 %v2093_v24  ;;  %2618 = vmatpush3.bf16.msra.mxu0 %v2690_v57 }
 0x637   : > { %v2096_v25 = vsel %vm417_vm0, %v3241_v18, 0.0 }
 0x638   : > { %2097 = vadd.xlane.f32.xlu1 %v2096_v25 }
 0x6c3   : > { %v2095_v26 = vpop.xlane.xlu0 %2094 }
 0x6c4   : > { %v2099_v27 = vmul.f32 0.03125, %v2095_v26 }
 0x6c5   : > { %v2098_v52 = vpop.xlane.xlu1 %2097 }
 0x6c6   : > { %v2101_v53 = vsub.f32 %v3236_v16, %v2099_v27  ;;  %v2100_v28 = vmul.f32 0.03125, %v2098_v52 }
 0x6c8   : > { %v2102_v29 = vsub.f32 %v3241_v18, %v2100_v28  ;;  %v2103_v30 = vmul.f32 %v2101_v53, %v2101_v53 }
 0x6ca   : > { %v2105_v31 = vsel %vm417_vm0, %v2103_v30, 0.0  ;;  %v2104_v32 = vmul.f32 %v2102_v29, %v2102_v29 }
 0x6cb   : > { %2106 = vadd.xlane.f32.xlu0 %v2105_v31 }
 0x6cc   : > { %v2108_v33 = vsel %vm417_vm0, %v2104_v32, 0.0 }
 0x6cd   : > { %2109 = vadd.xlane.f32.xlu1 %v2108_v33 }
 0x758   : > { %v2107_v38 = vpop.xlane.xlu0 %2106 }
 0x759   : > { %v2111_v41 = vmul.f32 0.03125, %v2107_v38 }
 0x75a   : > { %v2110_v39 = vpop.xlane.xlu1 %2109 }
 0x75b   : > { %v2113_v42 = vadd.f32 1e-05, %v2111_v41  ;;  %v2112_v43 = vmul.f32 0.03125, %v2110_v39 }
 0x75d   : > { %2727 = vrsqrt.f32 %v2113_v42  ;;  %v2114_v45 = vadd.f32 1e-05, %v2112_v43 }
 0x75f   : > { %2729 = vrsqrt.f32 %v2114_v45 }
 0x767   : > { %v2728_v47 = vpop.eup %2727 }
 0x768   : > { %v2117_v50 = vmul.f32 %v2728_v47, %v2101_v53 }
 0x769   : > { %v2730_v51 = vpop.eup %2729 }
 0x76a   : > { %v2125_v3 = vmul.f32 %v2454_v48, %v2117_v50  ;;  %v2118_v44 = vmul.f32 %v2730_v51, %v2102_v29 }
 0x76c   : > { %v2126_v55 = vmul.f32 %v2454_v48, %v2118_v44  ;;  %v2133_v59 = vadd.f32 %v2455_v54, %v2125_v3 }
 0x76e   : > { %v2134_v60 = vadd.f32 %v2455_v54, %v2126_v55 }
 0x770   : > { %v2135_v61 = vpack.c.bf16 %v2134_v60, %v2133_v59 }
 0x772   : > { %2600 = vmatmul.mubr.msk.bf16.vlgmr.msra.gmra.mrb[32].mxu1 %vm417_vm0, %v2135_v61 }
 0x845   : > { %v2196_v1 = vpop.f32.mrb[32].mxu1 }
 0x846   : > { %v2197_v2 = vadd.f32 %v2456_v58, %v2196_v1  ;;  %v2601_v36 = vpop.f32.mrb[33].mxu1 }
 0x847   : > { %v2199_v5 = vpop.f32.mrb[34].mxu1 }
 0x848   : > { %v2205_v6 = vmul.f32 0.70710677, %v2197_v2  ;;  %v2200_v7 = vadd.f32 %v2456_v58, %v2199_v5  ;;  %v2602_v56 = vpop.f32.mrb[35].mxu1  ;;  %v2203_v15 = vmul.f32 0.5, %v2197_v2 }
 0x84a   : > { %2731 = verf.f32 %v2205_v6  ;;  %v2206_v8 = vmul.f32 0.70710677, %v2200_v7  ;;  %v2204_v12 = vmul.f32 0.5, %v2200_v7 }
 0x84c   : > { %2733 = verf.f32 %v2206_v8 }
 0x854   : > { %v2732_v9 = vpop.eup %2731 }
 0x855   : > { %v2209_v10 = vadd.f32 1.0, %v2732_v9 }
 0x856   : > { %v2734_v11 = vpop.eup %2733 }
 0x857   : > { %v2210_v13 = vadd.f32 1.0, %v2734_v11  ;;  %v2211_v19 = vmul.f32 %v2209_v10, %v2203_v15 }
 0x859   : > { %v2212_v49 = vmul.f32 %v2210_v13, %v2204_v12 }
 0x85b   : > { %v2213_v20 = vpack.c.bf16 %v2212_v49, %v2211_v19 }
 0x85d   : > { %2620 = vmatmul.mubr.bf16.vlgmr.msra.gmra.mrb[20].mxu0 %v2213_v20 }
 0x930   : > { %v2319_v22 = vpop.f32.mrb[20].mxu0 }
 0x931   : > { %v2320_v23 = vadd.f32 %v2460_v21, %v2319_v22  ;;  %v2621_v14 = vpop.f32.mrb[21].mxu0 }
 0x932   : > { %v2322_v24 = vpop.f32.mrb[22].mxu0 }
 0x933   : > { %v2326_v17 = vadd.f32 %v2320_v23, %v3236_v16  ;;  %v2323_v25 = vadd.f32 %v2460_v21, %v2322_v24  ;;  %v2622_v26 = vpop.f32.mrb[23].mxu0 }
 0x935   : > { %2328 = vst.msk [vmem:[%s406_s18] sm:$0xff] %vm417_vm0, %v2326_v17  ;;  %v2327_v27 = vadd.f32 %v2323_v25, %v3241_v18 }
 0x937   : > { %2329 = vst.msk [vmem:[%s406_s18 + $0x8] sm:$0xff] %vm417_vm0, %v2327_v27 }
 0x938   : > { %2750 = shalt.err (!%p2747_p3)
}
 0x939   : > { %s2751_s15 = scalar_lea.hbm %s3306_s0, 256  ;;  %s2755_s29 = scalar_lea.hbm %s3366_s12, 512 }
 0x93a   : > { %p2752_p4 = scmp.ne.s32.totalorder %s3306_s0, %s2751_s15  ;;  %p2756_p9 = scmp.lt.u32.totalorder %s3306_s0, %s3366_s12 }
 0x93b   : > { %p2757_p10 = scmp.lt.u32.totalorder %s2755_s29, %s2751_s15  ;;  %p2759_p12 = scmp.lt.u32.totalorder %s2751_s15, %s3306_s0 }
 0x93c   : > { %p2753_p7 = pnand %p2752_p4, %p2922_p5 }
 0x93d   : > { %p2758_p11 = por %p2757_p10, %p2756_p9 }
 0x93e   : > { %p2754_p8 = pneg %p2753_p7 }
 0x93f   : > { %p2760_p13 = por %p2759_p12, %p2758_p11 }
 0x941   : > { %p2761_p0 = pnand %p2760_p13, %p2754_p8 }
 0x943   : > { %2764 = shalt.err (!%p2761_p0)
}
 0x944   : > { %s2817_s19 = smov 128   ;;  %s2818_s26 = smov 8  }
 0x945   : > { %2623 = dma.vmem_to_hbm [thread:$0]  (%p2922_p5), %s3308_s20, 256, %s3306_s0, %s3313_s25, %s2817_s19, %s2817_s19, %s2818_s26  }
 0x946 PF: > { %p2629_p1 = scmp.ge.s32.totalorder %s2799_s24, 2  ;;  %s2359_s18 = sand.u32 1, %s2787_s21  }
 0x947   : > { %s2360_s15 = scalar_lea.sflag [#allocation3], %s2359_s18 }
 0x948   : > { %p2626_p2 = pnand %p2629_p1, %p2926_p6 }
 0x94a   : > { %2782 = dma.done.wait (!%p2626_p2), %s2360_s15, 256  }
 0x94b   : > { %2784 = vsyncadd (!%p2626_p2), %s2360_s15, 4294967040  ;;  %p22_p3 = scmp.ge.s32.totalorder %s2909_s27, 4   ;;  %s3371_s21 = smov %s2791_s22 }
 0x94c   : > { %s3372_s22 = smov %s2795_s23  ;;  %s3373_s23 = smov %s2920_s30 }
 0x94d   : > { %s3374_s24 = smov %s2909_s27  ;;  %24 = sbr.rel (!%p22_p3) target bundleno = 5 (0x5), region = 106 }
 0x954   :  { %2365 = vsyncpa [#allocation3], 1 }
 0x955   :  { %2367 = vsyncpa [#allocation3 + $0x1], 1 }

</bundles_post_ra>
